<compile_context>
chip_gen: v7x
topology: tpu7x:2x2x1
jax: 0.10.0
libtpu: 0.0.40
codegen_flags: <defaults>
</compile_context>

<pallas_src>
import functools
import math

import jax
import jax.numpy as jnp
from jax.experimental import pallas as pl
from jax.experimental.pallas import tpu as pltpu


def _adaln_kernel(x_ref, g_ref, b_ref, o_ref, *, eps):
    """Per-batch-affine LayerNorm: o = ((x - mean) * rsqrt(var + eps)) * g_eff + b_eff."""
    x = x_ref[0].astype(jnp.float32)                        # (TS, F)
    mean = jnp.mean(x, axis=-1, keepdims=True)              # XLU cross-lane reduce
    xc = x - mean
    var = jnp.mean(xc * xc, axis=-1, keepdims=True)
    inv = jax.lax.rsqrt(var + eps)                          # EUP
    g = g_ref[0].astype(jnp.float32)                        # (1, F), broadcast over rows
    b = b_ref[0].astype(jnp.float32)                        # (1, F)
    # 1 sub + 2 mul + 1 add per element in the epilogue.
    o_ref[0] = ((xc * inv) * g + b).astype(o_ref.dtype)


def _choose_ts(S, block_seq):
    """Largest multiple-of-8 divisor of S that is <= block_seq (fallback: whole S)."""
    ts = min(block_seq, S)
    for cand in range(ts, 7, -1):
        if S % cand == 0 and cand % 8 == 0:
            return cand
    # TODO(synk): very small or awkward S falls back to a single tile; fine at test sizes.
    return S


def adaptive_layer_norm(x, t, w, b, gamma, beta, *, eps=1e-6, block_seq=1024):
    """AdaptiveLayerNorm forward.

    x:     (B, S, F)  tokens
    t:     (B, F)     conditioning vector
    w:     (F, 2F)    adaLN linear weight, pre-transposed from PyTorch's (2F, F)
    b:     (2F,)      adaLN linear bias
    gamma: (F,)       LayerNorm weight
    beta:  (F,)       LayerNorm bias
    """
    B, S, F = x.shape
    assert t.shape == (B, F)
    assert w.shape == (F, 2 * F) and b.shape == (2 * F,)
    assert gamma.shape == (F,) and beta.shape == (F,)

    # ---- conditioning MLP hoisted to the wrapper (tiny (B, 2F) op) --------------------------
    t32 = t.astype(jnp.float32)
    h = t32 * jax.nn.sigmoid(t32)                                   # SiLU
    mods = h @ w.astype(jnp.float32) + b.astype(jnp.float32)        # (B, 2F)
    shift = mods[:, :F]                                             # chunk 0 -> shift
    scale = mods[:, F:]                                             # chunk 1 -> scale
    one_plus_scale = 1.0 + scale
    gamma_eff = (gamma.astype(jnp.float32)[None, :] * one_plus_scale).reshape(B, 1, F)
    beta_eff = (beta.astype(jnp.float32)[None, :] * one_plus_scale + shift).reshape(B, 1, F)

    # ---- tiling ------------------------------------------------------------------------------
    TS = _choose_ts(S, block_seq)
    grid = (B, S // TS)

    tile_bytes = TS * F * x.dtype.itemsize
    # x in + out, double-buffered, plus f32 intermediates and per-batch affine params.
    vmem_limit = int(min(60 * 1024 * 1024, max(32 * 1024 * 1024, 8 * tile_bytes)))

    cost = pl.CostEstimate(
        flops=8 * B * S * F,
        transcendentals=B * S,                       # rsqrt per row
        bytes_accessed=2 * x.size * x.dtype.itemsize
        + gamma_eff.size * 4 + beta_eff.size * 4,
    )

    kernel = functools.partial(_adaln_kernel, eps=eps)
    return pl.pallas_call(
        kernel,
        out_shape=jax.ShapeDtypeStruct((B, S, F), x.dtype),
        grid_spec=pltpu.PrefetchScalarGridSpec(
            num_scalar_prefetch=0,
            grid=grid,
            in_specs=[
                pl.BlockSpec((1, TS, F), lambda bi, si: (bi, si, 0)),   # x tile
                pl.BlockSpec((1, 1, F), lambda bi, si: (bi, 0, 0)),     # gamma_eff (per batch)
                pl.BlockSpec((1, 1, F), lambda bi, si: (bi, 0, 0)),     # beta_eff  (per batch)
            ],
            out_specs=pl.BlockSpec((1, TS, F), lambda bi, si: (bi, si, 0)),
        ),
        compiler_params=pltpu.CompilerParams(
            dimension_semantics=("parallel", "parallel"),
            vmem_limit_bytes=vmem_limit),
        cost_estimate=cost,
    )(x, gamma_eff, beta_eff)


def reference(x, t, w, b, gamma, beta, *, eps=1e-6):
    h = t * jax.nn.sigmoid(t)
    mods = h @ w + b                                   # (B, 2F)
    F = x.shape[-1]
    shift = mods[:, None, :F]
    scale = mods[:, None, F:]
    mean = jnp.mean(x, axis=-1, keepdims=True)
    var = jnp.mean((x - mean) ** 2, axis=-1, keepdims=True)
    xn = (x - mean) * jax.lax.rsqrt(var + eps)
    y = xn * gamma + beta
    return y * (1.0 + scale) + shift


if __name__ == "__main__":
    B, S, F = 2, 512, 128   # F multiple of 128 for lane-dense stores; B=2 keeps both v7x TCs busy

    key = jax.random.PRNGKey(0)
    kx, kt, kw, kb, kg, kbe = jax.random.split(key, 6)

    x = jax.random.normal(kx, (B, S, F), dtype=jnp.float32)
    t = jax.random.normal(kt, (B, F), dtype=jnp.float32)
    # NOTE: the real module zero-initializes this Linear; use random values here so the
    # modulate path is actually exercised.  Weight stored pre-transposed: (F, 2F).
    w = jax.random.normal(kw, (F, 2 * F), dtype=jnp.float32) * (1.0 / math.sqrt(F))
    b = jax.random.normal(kb, (2 * F,), dtype=jnp.float32) * 0.02
    gamma = 1.0 + 0.1 * jax.random.normal(kg, (F,), dtype=jnp.float32)
    beta = 0.1 * jax.random.normal(kbe, (F,), dtype=jnp.float32)

    out = adaptive_layer_norm(x, t, w, b, gamma, beta)
    out = jax.block_until_ready(out)

    ref = reference(x, t, w, b, gamma, beta)
    assert out.shape == (B, S, F)
    assert jnp.allclose(out, ref, atol=1e-4, rtol=1e-4), "mismatch vs reference"

    print("KERNEL_OK")
</pallas_src>

<mosaic_0001>
module attributes {stable_mosaic.version = 11 : i64} {
  func.func @_adaln_kernel(%arg0: i32, %arg1: i32, %arg2: memref<1x512x128xf32, #tpu.memory_space<vmem>>, %arg3: memref<1x1x128xf32, #tpu.memory_space<vmem>>, %arg4: memref<1x1x128xf32, #tpu.memory_space<vmem>>, %arg5: memref<1x512x128xf32, #tpu.memory_space<vmem>>) attributes {dimension_semantics = [#tpu.dimension_semantics<parallel>, #tpu.dimension_semantics<parallel>], iteration_bounds = array<i64: 2, 1>, scalar_prefetch = 0 : i64, scratch_operands = 0 : i64, tpu.core_type = #tpu.core_type<tc>, window_params = [{transform_indices = @transform_0, window_bounds = array<i64: 1, 512, 128>}, {transform_indices = @transform_1, window_bounds = array<i64: 1, 1, 128>}, {transform_indices = @transform_2, window_bounds = array<i64: 1, 1, 128>}, {transform_indices = @transform_3, window_bounds = array<i64: 1, 512, 128>}]} {
    %c0 = arith.constant 0 : index
    %c0_0 = arith.constant 0 : index
    %c0_1 = arith.constant 0 : index
    %0 = vector.load %arg2[%c0, %c0_0, %c0_1] : memref<1x512x128xf32, #tpu.memory_space<vmem>>, vector<1x512x128xf32>
    %1 = vector.shape_cast %0 : vector<1x512x128xf32> to vector<512x128xf32>
    %cst = arith.constant dense<0.000000e+00> : vector<512xf32>
    %2 = vector.multi_reduction <add>, %1, %cst [1] : vector<512x128xf32> to vector<512xf32>
    %3 = vector.shape_cast %2 : vector<512xf32> to vector<512x1xf32>
    %cst_2 = arith.constant 1.280000e+02 : f32
    %4 = vector.broadcast %cst_2 : f32 to vector<512x1xf32>
    %5 = arith.divf %3, %4 : vector<512x1xf32>
    %6 = vector.broadcast %5 : vector<512x1xf32> to vector<512x128xf32>
    %7 = arith.subf %1, %6 : vector<512x128xf32>
    %8 = arith.mulf %7, %7 : vector<512x128xf32>
    %cst_3 = arith.constant dense<0.000000e+00> : vector<512xf32>
    %9 = vector.multi_reduction <add>, %8, %cst_3 [1] : vector<512x128xf32> to vector<512xf32>
    %10 = vector.shape_cast %9 : vector<512xf32> to vector<512x1xf32>
    %cst_4 = arith.constant 1.280000e+02 : f32
    %11 = vector.broadcast %cst_4 : f32 to vector<512x1xf32>
    %12 = arith.divf %10, %11 : vector<512x1xf32>
    %cst_5 = arith.constant 9.99999997E-7 : f32
    %13 = vector.broadcast %cst_5 : f32 to vector<512x1xf32>
    %14 = arith.addf %12, %13 : vector<512x1xf32>
    %15 = math.rsqrt %14 : vector<512x1xf32>
    %c0_6 = arith.constant 0 : index
    %c0_7 = arith.constant 0 : index
    %c0_8 = arith.constant 0 : index
    %16 = vector.load %arg3[%c0_6, %c0_7, %c0_8] : memref<1x1x128xf32, #tpu.memory_space<vmem>>, vector<1x1x128xf32>
    %17 = vector.shape_cast %16 : vector<1x1x128xf32> to vector<1x128xf32>
    %c0_9 = arith.constant 0 : index
    %c0_10 = arith.constant 0 : index
    %c0_11 = arith.constant 0 : index
    %18 = vector.load %arg4[%c0_9, %c0_10, %c0_11] : memref<1x1x128xf32, #tpu.memory_space<vmem>>, vector<1x1x128xf32>
    %19 = vector.shape_cast %18 : vector<1x1x128xf32> to vector<1x128xf32>
    %20 = vector.broadcast %15 : vector<512x1xf32> to vector<512x128xf32>
    %21 = arith.mulf %7, %20 : vector<512x128xf32>
    %22 = vector.broadcast %17 : vector<1x128xf32> to vector<512x128xf32>
    %23 = arith.mulf %21, %22 : vector<512x128xf32>
    %24 = vector.broadcast %19 : vector<1x128xf32> to vector<512x128xf32>
    %25 = arith.addf %23, %24 : vector<512x128xf32>
    %c0_12 = arith.constant 0 : index
    %c0_13 = arith.constant 0 : index
    %c0_14 = arith.constant 0 : index
    %26 = vector.load %arg5[%c0_12, %c0_13, %c0_14] : memref<1x512x128xf32, #tpu.memory_space<vmem>>, vector<1x512x128xf32>
    %27 = vector.shape_cast %26 : vector<1x512x128xf32> to vector<512x128xf32>
    %28 = vector.shape_cast %25 : vector<512x128xf32> to vector<1x512x128xf32>
    tpu.vector_store %arg5[%c0_12, %c0_13, %c0_14], %28 {strides = array<i32>} : memref<1x512x128xf32, #tpu.memory_space<vmem>>, vector<1x512x128xf32>,
    return
  }
  func.func @transform_0(%arg0: i32, %arg1: i32) -> (i32, i32, i32) {
    %c0_i32 = arith.constant 0 : i32
    %c0_i32_0 = arith.constant 0 : i32
    return %arg0, %arg1, %c0_i32 : i32, i32, i32
  }
  func.func @transform_1(%arg0: i32, %arg1: i32) -> (i32, i32, i32) {
    %c0_i32 = arith.constant 0 : i32
    %c0_i32_0 = arith.constant 0 : i32
    %c0_i32_1 = arith.constant 0 : i32
    return %arg0, %c0_i32, %c0_i32_0 : i32, i32, i32
  }
  func.func @transform_2(%arg0: i32, %arg1: i32) -> (i32, i32, i32) {
    %c0_i32 = arith.constant 0 : i32
    %c0_i32_0 = arith.constant 0 : i32
    %c0_i32_1 = arith.constant 0 : i32
    return %arg0, %c0_i32, %c0_i32_0 : i32, i32, i32
  }
  func.func @transform_3(%arg0: i32, %arg1: i32) -> (i32, i32, i32) {
    %c0_i32 = arith.constant 0 : i32
    %c0_i32_0 = arith.constant 0 : i32
    return %arg0, %arg1, %c0_i32 : i32, i32, i32
  }
}

</mosaic_0001>

<bundles_post_ra>
// kernel: tpu_custom_call.1
= control target key start
LH: loop header
LB: loop body
LE: loop exit
PB: predicated region body
PF: predicated region fallthrough
CT: control target
= control target key end

     0   :  { %8 = vsyncpa [#allocation3], 0  ;;  %s2708_s0 = inlined_call_operand.hbm [shape: f32[2,512,128], index: 0, kind: input, shape index: {}]   ;;  %s2709_s1 = inlined_call_operand.vmem [shape: f32[2,1,128], index: 1, kind: input, shape index: {}]   ;;  %s2710_s2 = inlined_call_operand.vmem [shape: f32[2,1,128], index: 2, kind: input, shape index: {}]   ;;  %s2711_s3 = inlined_call_operand.hbm [shape: f32[2,512,128], index: 3, kind: output, shape index: {}]  }
   0x1   :  { %10 = vsyncpa [#allocation3 + $0x1], 0 }
   0x2   :  { %11 = vsyncpa [#allocation4], 0 }
   0x3   :  { %13 = vsyncpa [#allocation4 + $0x1], 0  ;;  %s1688_s12 = smov 0   ;;  %s1690_s13 = smov 0  }
   0x4   :  { %s1692_s14 = smov 0   ;;  %s1694_s15 = smov 0  }
   0x5   :  { %s1696_s16 = smov 0   ;;  %s1698_s17 = smov 0  }
   0x6 LB: > { %s1333_s18 = sadd.s32 4294967295, %s1660_s17   ;;  %s1334_s19 = sadd.s32 4294967294, %s1660_s17   ;;  %s1660_s17 = sphi %s1698_s17, %s19_s17   ;;  %s1656_s16 = sphi %s1696_s16, %s2819_s16   ;;  %s1652_s15 = sphi %s1694_s15, %s2818_s15   ;;  %s1648_s14 = sphi %s1692_s14, %s2817_s14   ;;  %s1644_s13 = sphi %s1690_s13, %s2816_s13   ;;  %s1640_s12 = sphi %s1688_s12, %s2815_s12  }
   0x7   : > { %s31_s20 = sadd.s32 1, %s1656_s16  ;;  %s40_s21 = sadd.s32 1, %s1648_s14 }
   0x8   : > { %p33_p0 = scmp.ge.s32.totalorder %s31_s20, 2  ;;  %p47_p1 = scmp.ne.s32.totalorder %s1648_s14, %s1644_s13 }
   0x9   : > { %p48_p2 = scmp.eq.s32.totalorder %s1660_s17, 0  ;;  %p53_p3 = scmp.ne.s32.totalorder %s1644_s13, %s1640_s12 }
   0xa   : > { %s2821_s20 = smov (%p33_p0, %s31_s20), 0  ;;  %p54_p5 = scmp.eq.s32.totalorder %s1333_s18, 0 }
   0xb   : > { %p1729_p4 = por %p48_p2, %p47_p1  ;;  %s35_s23 = ssub.s32 %s1656_s16, %s2821_s20 }
   0xc   : > { %p131_p6 = scmp.eq.s32.totalorder %s1333_s18, 1  ;;  %p38_p7 = scmp.eq.s32.totalorder %s35_s23, 0 }
   0xd   : > { %p1735_p8 = por %p54_p5, %p53_p3  ;;  %p137_p10 = scmp.eq.s32.totalorder %s1334_s19, 1 }
   0xe   : > { %p1739_p9 = por %p131_p6, %p47_p1  ;;  %p1364_p13 = scmp.lt.s32.totalorder %s1660_s17, 2 }
   0xf   : > { %s1744_s26 = scalar_select %p38_p7, %s1648_s14, %s40_s21  }
  0x10   : > { %s2746_s25 = scalar_select %p1739_p9, 1, 0 }
  0x11   : > { %p1746_p11 = por %p137_p10, %p53_p3  ;;  %s157_s28 = sand.u32 1, %s1648_s14  }
  0x12   : > { %s1337_s29 = sshll.u32 %s157_s28, 9  ;;  %s1350_s30 = sshll.u32 %s1656_s16, 13 }
  0x13   : > { %s2747_s27 = scalar_select %p1746_p11, 1, 0 }
  0x14   : > { %s1757_s6 = scalar_lea.hbm %s2708_s0, %s1350_s30  ;;  %s161_s7 = scalar_lea.vmem [#allocation2], %s1337_s29 }
  0x15   : > { %s170_s8 = sshll.u32 %s161_s7, 4  ;;  %p1763_p0 = pnand %p1364_p13, %p1729_p4  ;;  %s1759_s8 = int_to_ptr.vmem [resolvable:$true] %s170_s8 }
  0x16   : > { %s1768_s10 = scalar_lea.sflag [#allocation3], %s157_s28  ;;  %s1548_s11 = scalar_lea.hbm %s1757_s6, 8192 }
  0x17   : > { %p1549_p2 = scmp.ne.s32.totalorder %s1757_s6, %s1548_s11  ;;  %p1550_p3 = pneg %p1763_p0 }
  0x18   : > { %s1553_s21 = scalar_lea.hbm %s2708_s0, 16384  ;;  %p1554_p4 = scmp.lt.u32.totalorder %s1757_s6, %s2708_s0 }
  0x19   : > { %p1551_p5 = pnand %p1550_p3, %p1549_p2  ;;  %p1555_p7 = scmp.lt.u32.totalorder %s1553_s21, %s1548_s11 }
  0x1a   : > { %p1557_p13 = scmp.lt.u32.totalorder %s1548_s11, %s1757_s6 }
  0x1b   : > { %p1552_p6 = pneg %p1551_p5  ;;  %p1556_p10 = por %p1555_p7, %p1554_p4 }
  0x1d   : > { %p1558_p12 = por %p1557_p13, %p1556_p10 }
  0x1f   : > { %p1559_p1 = pnand %p1558_p12, %p1552_p6 }
  0x21   : > { %1562 = shalt.err (!%p1559_p1)
}
  0x22   : > { %s1563_s28 = scalar_lea.vmem %s1759_s8, 8192  ;;  %s1662_s29 = smov [#allocation2]  }
  0x23   : > { %p1564_p2 = scmp.ne.s32.totalorder %s1759_s8, %s1563_s28  ;;  %s1568_s30 = sshll.u32 %s1662_s29, 4  ;;  %s1569_s30 = int_to_ptr.vmem [resolvable:$false] %s1568_s30 }
  0x24   : > { %s1570_s4 = scalar_lea.vmem %s1569_s30, 16384  ;;  %p1571_p9 = scmp.lt.s32.totalorder %s1759_s8, %s1569_s30 }
  0x25   : > { %p1566_p5 = pnand %p1564_p2, %p1550_p3  ;;  %p1572_p4 = scmp.lt.s32.totalorder %s1570_s4, %s1563_s28 }
  0x27   : > { %p1567_p11 = pneg %p1566_p5  ;;  %p1573_p7 = por %p1572_p4, %p1571_p9 }
  0x29   : > { %p1574_p10 = pnand %p1573_p7, %p1567_p11 }
  0x2b   : > { %1577 = shalt.err (!%p1574_p10)
}
  0x2c   : > { %s1663_s5 = smov 128   ;;  %s1664_s7 = smov 8  }
  0x2d   : > { %1359 = dma.hbm_to_vmem [thread:$0]  (!%p1763_p0), %s1757_s6, 8192, %s1759_s8, %s1768_s10, %s1663_s5, %s1663_s5, %s1664_s7  }
  0x2e   : > { %p190_p12 = scmp.lt.s32.totalorder %s1660_s17, 3  ;;  %p2749_p1 = scmp.ge.s32.totalorder %s1660_s17, 1 }
  0x30   : > { %p191_p3 = pnand %p2749_p1, %p190_p12 }
  0x32   : > { %194 = sbr.rel (%p191_p3) target bundleno = 516 (0x204), region = 32 }
  0x39   : > { %s1800_s11 = sand.u32 1, %s1644_s13  }
  0x3a   : > { %s1341_s18 = sshll.u32 %s1800_s11, 9  ;;  %s197_s19 = scalar_lea.sflag [#allocation3], %s1800_s11 }
  0x3b   : > { %s1806_s21 = scalar_lea.vmem [#allocation2], %s1341_s18 }
  0x3c   : > { %1631 = dma.done.wait (%p1735_p8), %s197_s19, 8192  }
  0x3d   : > { %1633 = vsyncadd (%p1735_p8), %s197_s19, 4294959104  ;;  %v1813_v0 = vld [vmem:[%s1806_s21] sm:$0xff]  ;;  %v1816_v1 = vld [vmem:[%s1806_s21 + $0x10] sm:$0xff]  ;;  %p230_p8 = scmp.lt.s32.totalorder %s1652_s15, 1  ;;  %s2413_s28 = scalar_lea.vmem [#allocation5], %s1341_s18 }
  0x3e   : > { %301 = vadd.xlane.f32.xlu0 %v1813_v0  ;;  %305 = vadd.xlane.f32.xlu1 %v1816_v1  ;;  %v1821_v2 = vld [vmem:[%s1806_s21 + $0x8] sm:$0xff]  ;;  %v1824_v3 = vld [vmem:[%s1806_s21 + $0x18] sm:$0xff]  ;;  %v1829_v4 = vld [vmem:[%s1806_s21 + $0x20] sm:$0xff]  ;;  %s1351_s29 = sshll.u32 %s1652_s15, 13  ;;  %s1228_s30 = sshll.u32 %s2413_s28, 4  ;;  %s2658_s30 = int_to_ptr.vmem [resolvable:$true] %s1228_s30 }
  0x3f   : > { %v1832_v5 = vld [vmem:[%s1806_s21 + $0x28] sm:$0xff]  ;;  %v1837_v6 = vld [vmem:[%s1806_s21 + $0x30] sm:$0xff]  ;;  %v1840_v7 = vld [vmem:[%s1806_s21 + $0x38] sm:$0xff]  ;;  %s231_s24 = scalar_select %p230_p8, %s1652_s15, 1 }
  0x40   : > { %v1845_v8 = vld [vmem:[%s1806_s21 + $0x40] sm:$0xff]  ;;  %v1848_v9 = vld [vmem:[%s1806_s21 + $0x48] sm:$0xff]  ;;  %v1853_v10 = vld [vmem:[%s1806_s21 + $0x50] sm:$0xff]  ;;  %s2656_s7 = scalar_lea.hbm %s2711_s3, %s1351_s29  ;;  %s1213_s18 = scalar_lea.sflag [#allocation4], %s1800_s11 }
  0x41   : > { %v1856_v11 = vld [vmem:[%s1806_s21 + $0x58] sm:$0xff]  ;;  %v1861_v12 = vld [vmem:[%s1806_s21 + $0x60] sm:$0xff]  ;;  %v1864_v13 = vld [vmem:[%s1806_s21 + $0x68] sm:$0xff]  ;;  %s2393_s9 = scalar_lea.vmem %s2709_s1, %s231_s24  ;;  %s2398_s23 = scalar_lea.vmem %s2710_s2, %s231_s24 }
  0x42   : > { %303 = vadd.xlane.f32.xlu0 %v1821_v2  ;;  %307 = vadd.xlane.f32.xlu1 %v1824_v3  ;;  %v1869_v14 = vld [vmem:[%s1806_s21 + $0x70] sm:$0xff]  ;;  %v1872_v15 = vld [vmem:[%s1806_s21 + $0x78] sm:$0xff]  ;;  %v1877_v16 = vld [vmem:[%s1806_s21 + $0x80] sm:$0xff]  ;;  %s1578_s19 = scalar_lea.vmem %s2658_s30, 8192  ;;  %p2812_p11 = scmp.ne.s32.totalorder %s2746_s25, 0 }
  0x43   : > { %v1880_v17 = vld [vmem:[%s1806_s21 + $0x88] sm:$0xff]  ;;  %v1885_v18 = vld [vmem:[%s1806_s21 + $0x90] sm:$0xff]  ;;  %v1888_v19 = vld [vmem:[%s1806_s21 + $0x98] sm:$0xff]  ;;  %p1579_p9 = scmp.ne.s32.totalorder %s2658_s30, %s1578_s19  ;;  %s1665_s15 = smov [#allocation5]  }
  0x44   : > { %v1893_v20 = vld [vmem:[%s1806_s21 + $0xa0] sm:$0xff]  ;;  %v1896_v21 = vld [vmem:[%s1806_s21 + $0xa8] sm:$0xff]  ;;  %v1901_v22 = vld [vmem:[%s1806_s21 + $0xb0] sm:$0xff] }
  0x45   : > { %v1904_v23 = vld [vmem:[%s1806_s21 + $0xb8] sm:$0xff]  ;;  %v1909_v24 = vld [vmem:[%s1806_s21 + $0xc0] sm:$0xff]  ;;  %v1912_v25 = vld [vmem:[%s1806_s21 + $0xc8] sm:$0xff]  ;;  %p1580_p0 = pnand %p1579_p9, %p2812_p11 }
  0x46   : > { %309 = vadd.xlane.f32.xlu0 %v1829_v4  ;;  %311 = vadd.xlane.f32.xlu1 %v1832_v5  ;;  %v1917_v26 = vld [vmem:[%s1806_s21 + $0xd0] sm:$0xff]  ;;  %v1920_v27 = vld [vmem:[%s1806_s21 + $0xd8] sm:$0xff]  ;;  %v1925_v28 = vld [vmem:[%s1806_s21 + $0xe0] sm:$0xff] }
  0x47   : > { %v1928_v29 = vld [vmem:[%s1806_s21 + $0xe8] sm:$0xff]  ;;  %v1933_v30 = vld [vmem:[%s1806_s21 + $0xf0] sm:$0xff]  ;;  %v1936_v31 = vld [vmem:[%s1806_s21 + $0xf8] sm:$0xff]  ;;  %p1581_p6 = pneg %p1580_p0 }
  0x48   : > { %v1941_v32 = vld [vmem:[%s1806_s21 + $0x100] sm:$0xff]  ;;  %v1944_v33 = vld [vmem:[%s1806_s21 + $0x108] sm:$0xff]  ;;  %v1949_v34 = vld [vmem:[%s1806_s21 + $0x110] sm:$0xff] }
  0x49   : > { %v1952_v35 = vld [vmem:[%s1806_s21 + $0x118] sm:$0xff]  ;;  %v1957_v36 = vld [vmem:[%s1806_s21 + $0x120] sm:$0xff]  ;;  %v1960_v37 = vld [vmem:[%s1806_s21 + $0x128] sm:$0xff] }
  0x4a   : > { %313 = vadd.xlane.f32.xlu0 %v1837_v6  ;;  %315 = vadd.xlane.f32.xlu1 %v1840_v7  ;;  %v1965_v38 = vld [vmem:[%s1806_s21 + $0x130] sm:$0xff]  ;;  %v1968_v39 = vld [vmem:[%s1806_s21 + $0x138] sm:$0xff]  ;;  %v1973_v40 = vld [vmem:[%s1806_s21 + $0x140] sm:$0xff] }
  0x4b   : > { %v1976_v41 = vld [vmem:[%s1806_s21 + $0x148] sm:$0xff]  ;;  %v1981_v42 = vld [vmem:[%s1806_s21 + $0x150] sm:$0xff]  ;;  %v1984_v43 = vld [vmem:[%s1806_s21 + $0x158] sm:$0xff] }
  0x4c   : > { %v1989_v44 = vld [vmem:[%s1806_s21 + $0x160] sm:$0xff]  ;;  %v1992_v45 = vld [vmem:[%s1806_s21 + $0x168] sm:$0xff]  ;;  %v1997_v46 = vld [vmem:[%s1806_s21 + $0x170] sm:$0xff] }
  0x4d   : > { %v2000_v47 = vld [vmem:[%s1806_s21 + $0x178] sm:$0xff]  ;;  %v2005_v48 = vld [vmem:[%s1806_s21 + $0x180] sm:$0xff]  ;;  %v2008_v49 = vld [vmem:[%s1806_s21 + $0x188] sm:$0xff] }
  0x4e   : > { %317 = vadd.xlane.f32.xlu0 %v1845_v8  ;;  %319 = vadd.xlane.f32.xlu1 %v1848_v9  ;;  %v2013_v50 = vld [vmem:[%s1806_s21 + $0x190] sm:$0xff]  ;;  %v2016_v51 = vld [vmem:[%s1806_s21 + $0x198] sm:$0xff]  ;;  %v2021_v52 = vld [vmem:[%s1806_s21 + $0x1a0] sm:$0xff] }
  0x4f   : > { %2750 = vst [vmem:[#allocation8_spill] sm:$0xff] %v2016_v51  ;;  %2751 = vst [vmem:[#allocation9_spill] sm:$0xff] %v2021_v52  ;;  %v2024_v53 = vld [vmem:[%s1806_s21 + $0x1a8] sm:$0xff]  ;;  %v2029_v54 = vld [vmem:[%s1806_s21 + $0x1b0] sm:$0xff] }
  0x50   : > { %2752 = vst [vmem:[#allocation10_spill] sm:$0xff] %v2024_v53  ;;  %2753 = vst [vmem:[#allocation11_spill] sm:$0xff] %v2029_v54  ;;  %v2032_v55 = vld [vmem:[%s1806_s21 + $0x1b8] sm:$0xff]  ;;  %v2037_v56 = vld [vmem:[%s1806_s21 + $0x1c0] sm:$0xff] }
  0x51   : > { %2754 = vst [vmem:[#allocation12_spill] sm:$0xff] %v2032_v55  ;;  %2755 = vst [vmem:[#allocation13_spill] sm:$0xff] %v2037_v56  ;;  %v2040_v57 = vld [vmem:[%s1806_s21 + $0x1c8] sm:$0xff]  ;;  %v2045_v58 = vld [vmem:[%s1806_s21 + $0x1d0] sm:$0xff] }
  0x52   : > { %321 = vadd.xlane.f32.xlu0 %v1853_v10  ;;  %323 = vadd.xlane.f32.xlu1 %v1856_v11  ;;  %2756 = vst [vmem:[#allocation14_spill] sm:$0xff] %v2040_v57  ;;  %2757 = vst [vmem:[#allocation15_spill] sm:$0xff] %v2045_v58  ;;  %v2048_v59 = vld [vmem:[%s1806_s21 + $0x1d8] sm:$0xff]  ;;  %v2053_v60 = vld [vmem:[%s1806_s21 + $0x1e0] sm:$0xff] }
  0x53   : > { %2758 = vst [vmem:[#allocation16_spill] sm:$0xff] %v2048_v59  ;;  %2759 = vst [vmem:[#allocation17_spill] sm:$0xff] %v2053_v60  ;;  %v2056_v61 = vld [vmem:[%s1806_s21 + $0x1e8] sm:$0xff]  ;;  %v2061_v62 = vld [vmem:[%s1806_s21 + $0x1f0] sm:$0xff] }
  0x54   : > { %2760 = vst [vmem:[#allocation18_spill] sm:$0xff] %v2056_v61  ;;  %v2064_v63 = vld [vmem:[%s1806_s21 + $0x1f8] sm:$0xff]  ;;  %s1582_s21 = sshll.u32 %s1665_s15, 4  ;;  %s1583_s21 = int_to_ptr.vmem [resolvable:$false] %s1582_s21 }
  0x55   : > { %2761 = vst [vmem:[#allocation19_spill] sm:$0xff] %v2064_v63  ;;  %s1584_s24 = scalar_lea.vmem %s1583_s21, 16384  ;;  %p1585_p13 = scmp.lt.s32.totalorder %s2658_s30, %s1583_s21 }
  0x56   : > { %325 = vadd.xlane.f32.xlu0 %v1861_v12  ;;  %327 = vadd.xlane.f32.xlu1 %v1864_v13  ;;  %p1586_p2 = scmp.lt.s32.totalorder %s1584_s24, %s1578_s19 }
  0x58   : > { %p1587_p5 = por %p1586_p2, %p1585_p13 }
  0x5a   : > { %329 = vadd.xlane.f32.xlu0 %v1869_v14  ;;  %331 = vadd.xlane.f32.xlu1 %v1872_v15  ;;  %p1588_p4 = pnand %p1587_p5, %p1581_p6 }
  0x5e   : > { %333 = vadd.xlane.f32.xlu0 %v1877_v16  ;;  %335 = vadd.xlane.f32.xlu1 %v1880_v17 }
  0x62   : > { %337 = vadd.xlane.f32.xlu0 %v1885_v18  ;;  %339 = vadd.xlane.f32.xlu1 %v1888_v19 }
  0x66   : > { %341 = vadd.xlane.f32.xlu0 %v1893_v20  ;;  %343 = vadd.xlane.f32.xlu1 %v1896_v21 }
  0x6a   : > { %345 = vadd.xlane.f32.xlu0 %v1901_v22  ;;  %347 = vadd.xlane.f32.xlu1 %v1904_v23 }
  0x6e   : > { %349 = vadd.xlane.f32.xlu0 %v1909_v24  ;;  %351 = vadd.xlane.f32.xlu1 %v1912_v25 }
  0x72   : > { %353 = vadd.xlane.f32.xlu0 %v1917_v26  ;;  %355 = vadd.xlane.f32.xlu1 %v1920_v27 }
  0x76   : > { %357 = vadd.xlane.f32.xlu0 %v1925_v28  ;;  %359 = vadd.xlane.f32.xlu1 %v1928_v29 }
  0x7a   : > { %361 = vadd.xlane.f32.xlu0 %v1933_v30  ;;  %363 = vadd.xlane.f32.xlu1 %v1936_v31 }
  0x7e   : > { %365 = vadd.xlane.f32.xlu0 %v1941_v32  ;;  %367 = vadd.xlane.f32.xlu1 %v1944_v33 }
  0x82   : > { %369 = vadd.xlane.f32.xlu0 %v1949_v34  ;;  %371 = vadd.xlane.f32.xlu1 %v1952_v35 }
  0x86   : > { %373 = vadd.xlane.f32.xlu0 %v1957_v36  ;;  %375 = vadd.xlane.f32.xlu1 %v1960_v37 }
  0x8a   : > { %377 = vadd.xlane.f32.xlu0 %v1965_v38  ;;  %379 = vadd.xlane.f32.xlu1 %v1968_v39 }
  0x8e   : > { %381 = vadd.xlane.f32.xlu0 %v1973_v40  ;;  %383 = vadd.xlane.f32.xlu1 %v1976_v41 }
  0x92   : > { %385 = vadd.xlane.f32.xlu0 %v1981_v42  ;;  %387 = vadd.xlane.f32.xlu1 %v1984_v43 }
  0x96   : > { %389 = vadd.xlane.f32.xlu0 %v1989_v44  ;;  %391 = vadd.xlane.f32.xlu1 %v1992_v45 }
  0x9a   : > { %393 = vadd.xlane.f32.xlu0 %v1997_v46  ;;  %395 = vadd.xlane.f32.xlu1 %v2000_v47 }
  0x9e   : > { %397 = vadd.xlane.f32.xlu0 %v2005_v48  ;;  %399 = vadd.xlane.f32.xlu1 %v2008_v49 }
  0xa2   : > { %401 = vadd.xlane.f32.xlu0 %v2013_v50  ;;  %403 = vadd.xlane.f32.xlu1 %v2016_v51 }
  0xa6   : > { %405 = vadd.xlane.f32.xlu0 %v2021_v52  ;;  %407 = vadd.xlane.f32.xlu1 %v2024_v53 }
  0xaa   : > { %409 = vadd.xlane.f32.xlu0 %v2029_v54  ;;  %411 = vadd.xlane.f32.xlu1 %v2032_v55 }
  0xae   : > { %413 = vadd.xlane.f32.xlu0 %v2037_v56  ;;  %415 = vadd.xlane.f32.xlu1 %v2040_v57 }
  0xb2   : > { %417 = vadd.xlane.f32.xlu0 %v2045_v58  ;;  %419 = vadd.xlane.f32.xlu1 %v2048_v59 }
  0xb6   : > { %421 = vadd.xlane.f32.xlu0 %v2053_v60  ;;  %423 = vadd.xlane.f32.xlu1 %v2056_v61 }
  0xba   : > { %425 = vadd.xlane.f32.xlu0 %v2061_v62  ;;  %427 = vadd.xlane.f32.xlu1 %v2064_v63 }
  0xcb   : > { %v302_v57 = vpop.xlane.xlu0 %301  ;;  %v306_v58 = vpop.xlane.xlu1 %305 }
  0xcc   : > { %v430_v56 = vmul.f32 0.0078125, %v302_v57  ;;  %v432_v59 = vmul.f32 0.0078125, %v306_v58 }
  0xce   : > { %v2069_v55 = vsub.f32 %v1813_v0, %v430_v56  ;;  %v2072_v54 = vsub.f32 %v1816_v1, %v432_v59 }
  0xcf   : > { %v304_v60 = vpop.xlane.xlu0 %303  ;;  %v308_v61 = vpop.xlane.xlu1 %307 }
  0xd0   : > { %2762 = vst [vmem:[#allocation20_spill] sm:$0xff] %v2072_v54  ;;  %v431_v53 = vmul.f32 0.0078125, %v304_v60  ;;  %v558_v52 = vmul.f32 %v2069_v55, %v2069_v55  ;;  %v433_v51 = vmul.f32 0.0078125, %v308_v61  ;;  %v560_v63 = vmul.f32 %v2072_v54, %v2072_v54 }
  0xd2   : > { %622 = vadd.xlane.f32.xlu0 %v558_v52  ;;  %v2079_v57 = vsub.f32 %v1821_v2, %v431_v53  ;;  %v2082_v0 = vsub.f32 %v1824_v3, %v433_v51 }
  0xd3   : > { %v310_v56 = vpop.xlane.xlu0 %309  ;;  %v312_v1 = vpop.xlane.xlu1 %311 }
  0xd4   : > { %v434_v58 = vmul.f32 0.0078125, %v310_v56  ;;  %v559_v59 = vmul.f32 %v2079_v57, %v2079_v57  ;;  %v435_v60 = vmul.f32 0.0078125, %v312_v1  ;;  %v561_v52 = vmul.f32 %v2082_v0, %v2082_v0 }
  0xd6   : > { %626 = vadd.xlane.f32.xlu0 %v560_v63  ;;  %624 = vadd.xlane.f32.xlu1 %v559_v59  ;;  %v2089_v61 = vsub.f32 %v1829_v4, %v434_v58  ;;  %v2092_v2 = vsub.f32 %v1832_v5, %v435_v60 }
  0xd7   : > { %v314_v3 = vpop.xlane.xlu0 %313  ;;  %v316_v51 = vpop.xlane.xlu1 %315 }
  0xd8   : > { %v436_v53 = vmul.f32 0.0078125, %v314_v3  ;;  %v562_v56 = vmul.f32 %v2089_v61, %v2089_v61  ;;  %v437_v54 = vmul.f32 0.0078125, %v316_v51  ;;  %v563_v63 = vmul.f32 %v2092_v2, %v2092_v2 }
  0xda   : > { %628 = vadd.xlane.f32.xlu1 %v561_v52  ;;  %630 = vadd.xlane.f32.xlu0 %v562_v56  ;;  %v2099_v1 = vsub.f32 %v1837_v6, %v436_v53  ;;  %v2102_v4 = vsub.f32 %v1840_v7, %v437_v54 }
  0xdb   : > { %v318_v5 = vpop.xlane.xlu0 %317  ;;  %v320_v58 = vpop.xlane.xlu1 %319 }
  0xdc   : > { %v438_v59 = vmul.f32 0.0078125, %v318_v5  ;;  %v564_v60 = vmul.f32 %v2099_v1, %v2099_v1  ;;  %v439_v3 = vmul.f32 0.0078125, %v320_v58  ;;  %v565_v52 = vmul.f32 %v2102_v4, %v2102_v4 }
  0xde   : > { %632 = vadd.xlane.f32.xlu1 %v563_v63  ;;  %634 = vadd.xlane.f32.xlu0 %v564_v60  ;;  %v2109_v51 = vsub.f32 %v1845_v8, %v438_v59  ;;  %v2112_v6 = vsub.f32 %v1848_v9, %v439_v3 }
  0xdf   : > { %v322_v7 = vpop.xlane.xlu0 %321  ;;  %v324_v54 = vpop.xlane.xlu1 %323 }
  0xe0   : > { %v440_v53 = vmul.f32 0.0078125, %v322_v7  ;;  %v566_v56 = vmul.f32 %v2109_v51, %v2109_v51  ;;  %v441_v5 = vmul.f32 0.0078125, %v324_v54  ;;  %v567_v63 = vmul.f32 %v2112_v6, %v2112_v6 }
  0xe2   : > { %636 = vadd.xlane.f32.xlu1 %v565_v52  ;;  %638 = vadd.xlane.f32.xlu0 %v566_v56  ;;  %v2119_v58 = vsub.f32 %v1853_v10, %v440_v53  ;;  %v2122_v8 = vsub.f32 %v1856_v11, %v441_v5 }
  0xe3   : > { %v326_v9 = vpop.xlane.xlu0 %325  ;;  %v328_v59 = vpop.xlane.xlu1 %327 }
  0xe4   : > { %v442_v60 = vmul.f32 0.0078125, %v326_v9  ;;  %v568_v3 = vmul.f32 %v2119_v58, %v2119_v58  ;;  %v443_v7 = vmul.f32 0.0078125, %v328_v59  ;;  %v569_v52 = vmul.f32 %v2122_v8, %v2122_v8 }
  0xe6   : > { %640 = vadd.xlane.f32.xlu1 %v567_v63  ;;  %642 = vadd.xlane.f32.xlu0 %v568_v3  ;;  %v2129_v54 = vsub.f32 %v1861_v12, %v442_v60  ;;  %v2132_v10 = vsub.f32 %v1864_v13, %v443_v7 }
  0xe7   : > { %v330_v11 = vpop.xlane.xlu0 %329  ;;  %v332_v53 = vpop.xlane.xlu1 %331 }
  0xe8   : > { %v444_v56 = vmul.f32 0.0078125, %v330_v11  ;;  %v570_v5 = vmul.f32 %v2129_v54, %v2129_v54  ;;  %v445_v9 = vmul.f32 0.0078125, %v332_v53  ;;  %v571_v63 = vmul.f32 %v2132_v10, %v2132_v10 }
  0xea   : > { %644 = vadd.xlane.f32.xlu1 %v569_v52  ;;  %646 = vadd.xlane.f32.xlu0 %v570_v5  ;;  %v2139_v59 = vsub.f32 %v1869_v14, %v444_v56  ;;  %v2142_v12 = vsub.f32 %v1872_v15, %v445_v9 }
  0xeb   : > { %v334_v13 = vpop.xlane.xlu0 %333  ;;  %v336_v60 = vpop.xlane.xlu1 %335 }
  0xec   : > { %v446_v3 = vmul.f32 0.0078125, %v334_v13  ;;  %v572_v7 = vmul.f32 %v2139_v59, %v2139_v59  ;;  %v447_v11 = vmul.f32 0.0078125, %v336_v60  ;;  %v573_v52 = vmul.f32 %v2142_v12, %v2142_v12 }
  0xee   : > { %648 = vadd.xlane.f32.xlu1 %v571_v63  ;;  %650 = vadd.xlane.f32.xlu0 %v572_v7  ;;  %v2149_v53 = vsub.f32 %v1877_v16, %v446_v3  ;;  %v2152_v14 = vsub.f32 %v1880_v17, %v447_v11 }
  0xef   : > { %v338_v15 = vpop.xlane.xlu0 %337  ;;  %v340_v56 = vpop.xlane.xlu1 %339 }
  0xf0   : > { %v448_v5 = vmul.f32 0.0078125, %v338_v15  ;;  %v574_v9 = vmul.f32 %v2149_v53, %v2149_v53  ;;  %v449_v13 = vmul.f32 0.0078125, %v340_v56  ;;  %v575_v63 = vmul.f32 %v2152_v14, %v2152_v14 }
  0xf2   : > { %652 = vadd.xlane.f32.xlu1 %v573_v52  ;;  %654 = vadd.xlane.f32.xlu0 %v574_v9  ;;  %v2159_v60 = vsub.f32 %v1885_v18, %v448_v5  ;;  %v2162_v16 = vsub.f32 %v1888_v19, %v449_v13 }
  0xf3   : > { %v342_v17 = vpop.xlane.xlu0 %341  ;;  %v344_v3 = vpop.xlane.xlu1 %343 }
  0xf4   : > { %v450_v7 = vmul.f32 0.0078125, %v342_v17  ;;  %v576_v11 = vmul.f32 %v2159_v60, %v2159_v60  ;;  %v451_v15 = vmul.f32 0.0078125, %v344_v3  ;;  %v577_v52 = vmul.f32 %v2162_v16, %v2162_v16 }
  0xf6   : > { %656 = vadd.xlane.f32.xlu1 %v575_v63  ;;  %658 = vadd.xlane.f32.xlu0 %v576_v11  ;;  %v2169_v56 = vsub.f32 %v1893_v20, %v450_v7  ;;  %v2172_v18 = vsub.f32 %v1896_v21, %v451_v15 }
  0xf7   : > { %v346_v19 = vpop.xlane.xlu0 %345  ;;  %v348_v5 = vpop.xlane.xlu1 %347 }
  0xf8   : > { %v452_v9 = vmul.f32 0.0078125, %v346_v19  ;;  %v578_v13 = vmul.f32 %v2169_v56, %v2169_v56  ;;  %v453_v17 = vmul.f32 0.0078125, %v348_v5  ;;  %v579_v63 = vmul.f32 %v2172_v18, %v2172_v18 }
  0xfa   : > { %660 = vadd.xlane.f32.xlu1 %v577_v52  ;;  %662 = vadd.xlane.f32.xlu0 %v578_v13  ;;  %v2179_v3 = vsub.f32 %v1901_v22, %v452_v9  ;;  %v2182_v20 = vsub.f32 %v1904_v23, %v453_v17 }
  0xfb   : > { %v350_v21 = vpop.xlane.xlu0 %349  ;;  %v352_v7 = vpop.xlane.xlu1 %351 }
  0xfc   : > { %v454_v11 = vmul.f32 0.0078125, %v350_v21  ;;  %v580_v15 = vmul.f32 %v2179_v3, %v2179_v3  ;;  %v455_v19 = vmul.f32 0.0078125, %v352_v7  ;;  %v581_v52 = vmul.f32 %v2182_v20, %v2182_v20 }
  0xfe   : > { %664 = vadd.xlane.f32.xlu1 %v579_v63  ;;  %666 = vadd.xlane.f32.xlu0 %v580_v15  ;;  %v2189_v5 = vsub.f32 %v1909_v24, %v454_v11  ;;  %v2192_v22 = vsub.f32 %v1912_v25, %v455_v19 }
  0xff   : > { %v354_v23 = vpop.xlane.xlu0 %353  ;;  %v356_v9 = vpop.xlane.xlu1 %355 }
 0x100   : > { %v456_v13 = vmul.f32 0.0078125, %v354_v23  ;;  %v582_v17 = vmul.f32 %v2189_v5, %v2189_v5  ;;  %v457_v21 = vmul.f32 0.0078125, %v356_v9  ;;  %v583_v63 = vmul.f32 %v2192_v22, %v2192_v22 }
 0x102   : > { %668 = vadd.xlane.f32.xlu1 %v581_v52  ;;  %670 = vadd.xlane.f32.xlu0 %v582_v17  ;;  %v2199_v7 = vsub.f32 %v1917_v26, %v456_v13  ;;  %v2202_v24 = vsub.f32 %v1920_v27, %v457_v21 }
 0x103   : > { %v358_v25 = vpop.xlane.xlu0 %357  ;;  %v360_v11 = vpop.xlane.xlu1 %359 }
 0x104   : > { %v458_v15 = vmul.f32 0.0078125, %v358_v25  ;;  %v584_v19 = vmul.f32 %v2199_v7, %v2199_v7  ;;  %v459_v23 = vmul.f32 0.0078125, %v360_v11  ;;  %v585_v52 = vmul.f32 %v2202_v24, %v2202_v24 }
 0x106   : > { %672 = vadd.xlane.f32.xlu1 %v583_v63  ;;  %674 = vadd.xlane.f32.xlu0 %v584_v19  ;;  %v2209_v9 = vsub.f32 %v1925_v28, %v458_v15  ;;  %v2212_v26 = vsub.f32 %v1928_v29, %v459_v23 }
 0x107   : > { %v362_v27 = vpop.xlane.xlu0 %361  ;;  %v364_v13 = vpop.xlane.xlu1 %363 }
 0x108   : > { %v460_v17 = vmul.f32 0.0078125, %v362_v27  ;;  %v586_v21 = vmul.f32 %v2209_v9, %v2209_v9  ;;  %v461_v25 = vmul.f32 0.0078125, %v364_v13  ;;  %v587_v28 = vmul.f32 %v2212_v26, %v2212_v26 }
 0x10a   : > { %v2217_v11 = vsub.f32 %v1933_v30, %v460_v17  ;;  %676 = vadd.xlane.f32.xlu1 %v585_v52  ;;  %678 = vadd.xlane.f32.xlu0 %v586_v21  ;;  %v2220_v63 = vsub.f32 %v1936_v31, %v461_v25 }
 0x10b   : > { %v366_v29 = vpop.xlane.xlu0 %365  ;;  %v368_v15 = vpop.xlane.xlu1 %367 }
 0x10c   : > { %v462_v19 = vmul.f32 0.0078125, %v366_v29  ;;  %v588_v23 = vmul.f32 %v2217_v11, %v2217_v11  ;;  %v463_v27 = vmul.f32 0.0078125, %v368_v15  ;;  %v589_v31 = vmul.f32 %v2220_v63, %v2220_v63 }
 0x10e   : > { %v2227_v13 = vsub.f32 %v1941_v32, %v462_v19  ;;  %680 = vadd.xlane.f32.xlu1 %v587_v28  ;;  %682 = vadd.xlane.f32.xlu0 %v588_v23  ;;  %v2230_v30 = vsub.f32 %v1944_v33, %v463_v27 }
 0x10f   : > { %v370_v52 = vpop.xlane.xlu0 %369  ;;  %v372_v17 = vpop.xlane.xlu1 %371 }
 0x110   : > { %v464_v21 = vmul.f32 0.0078125, %v370_v52  ;;  %v590_v25 = vmul.f32 %v2227_v13, %v2227_v13  ;;  %v465_v29 = vmul.f32 0.0078125, %v372_v17  ;;  %v591_v33 = vmul.f32 %v2230_v30, %v2230_v30 }
 0x112   : > { %v2237_v15 = vsub.f32 %v1949_v34, %v464_v21  ;;  %684 = vadd.xlane.f32.xlu1 %v589_v31  ;;  %686 = vadd.xlane.f32.xlu0 %v590_v25  ;;  %v2240_v32 = vsub.f32 %v1952_v35, %v465_v29 }
 0x113   : > { %v374_v28 = vpop.xlane.xlu0 %373  ;;  %v376_v19 = vpop.xlane.xlu1 %375 }
 0x114   : > { %v466_v23 = vmul.f32 0.0078125, %v374_v28  ;;  %v592_v27 = vmul.f32 %v2237_v15, %v2237_v15  ;;  %v467_v52 = vmul.f32 0.0078125, %v376_v19  ;;  %v593_v35 = vmul.f32 %v2240_v32, %v2240_v32 }
 0x116   : > { %v2247_v17 = vsub.f32 %v1957_v36, %v466_v23  ;;  %688 = vadd.xlane.f32.xlu1 %v591_v33  ;;  %690 = vadd.xlane.f32.xlu0 %v592_v27  ;;  %v2250_v34 = vsub.f32 %v1960_v37, %v467_v52 }
 0x117   : > { %v378_v31 = vpop.xlane.xlu0 %377  ;;  %v380_v21 = vpop.xlane.xlu1 %379 }
 0x118   : > { %v468_v25 = vmul.f32 0.0078125, %v378_v31  ;;  %v594_v29 = vmul.f32 %v2247_v17, %v2247_v17  ;;  %v469_v28 = vmul.f32 0.0078125, %v380_v21  ;;  %v595_v37 = vmul.f32 %v2250_v34, %v2250_v34 }
 0x11a   : > { %v2257_v19 = vsub.f32 %v1965_v38, %v468_v25  ;;  %692 = vadd.xlane.f32.xlu1 %v593_v35  ;;  %694 = vadd.xlane.f32.xlu0 %v594_v29  ;;  %v2260_v36 = vsub.f32 %v1968_v39, %v469_v28 }
 0x11b   : > { %v382_v33 = vpop.xlane.xlu0 %381  ;;  %v384_v23 = vpop.xlane.xlu1 %383 }
 0x11c   : > { %v470_v27 = vmul.f32 0.0078125, %v382_v33  ;;  %v596_v52 = vmul.f32 %v2257_v19, %v2257_v19  ;;  %v471_v31 = vmul.f32 0.0078125, %v384_v23  ;;  %v597_v39 = vmul.f32 %v2260_v36, %v2260_v36 }
 0x11e   : > { %v2267_v21 = vsub.f32 %v1973_v40, %v470_v27  ;;  %696 = vadd.xlane.f32.xlu1 %v595_v37  ;;  %698 = vadd.xlane.f32.xlu0 %v596_v52  ;;  %v2270_v38 = vsub.f32 %v1976_v41, %v471_v31 }
 0x11f   : > { %v386_v35 = vpop.xlane.xlu0 %385  ;;  %v388_v25 = vpop.xlane.xlu1 %387 }
 0x120   : > { %v472_v29 = vmul.f32 0.0078125, %v386_v35  ;;  %v598_v28 = vmul.f32 %v2267_v21, %v2267_v21  ;;  %v473_v33 = vmul.f32 0.0078125, %v388_v25  ;;  %v599_v41 = vmul.f32 %v2270_v38, %v2270_v38 }
 0x122   : > { %v2277_v23 = vsub.f32 %v1981_v42, %v472_v29  ;;  %700 = vadd.xlane.f32.xlu1 %v597_v39  ;;  %702 = vadd.xlane.f32.xlu0 %v598_v28  ;;  %v2280_v40 = vsub.f32 %v1984_v43, %v473_v33 }
 0x123   : > { %v390_v37 = vpop.xlane.xlu0 %389  ;;  %v392_v27 = vpop.xlane.xlu1 %391 }
 0x124   : > { %v474_v52 = vmul.f32 0.0078125, %v390_v37  ;;  %v600_v31 = vmul.f32 %v2277_v23, %v2277_v23  ;;  %v475_v35 = vmul.f32 0.0078125, %v392_v27  ;;  %v601_v43 = vmul.f32 %v2280_v40, %v2280_v40 }
 0x126   : > { %v2287_v25 = vsub.f32 %v1989_v44, %v474_v52  ;;  %704 = vadd.xlane.f32.xlu1 %v599_v41  ;;  %706 = vadd.xlane.f32.xlu0 %v600_v31  ;;  %v2290_v42 = vsub.f32 %v1992_v45, %v475_v35 }
 0x127   : > { %v394_v39 = vpop.xlane.xlu0 %393  ;;  %v396_v29 = vpop.xlane.xlu1 %395 }
 0x128   : > { %v476_v28 = vmul.f32 0.0078125, %v394_v39  ;;  %v602_v33 = vmul.f32 %v2287_v25, %v2287_v25  ;;  %v477_v37 = vmul.f32 0.0078125, %v396_v29  ;;  %v603_v45 = vmul.f32 %v2290_v42, %v2290_v42 }
 0x12a   : > { %v2297_v27 = vsub.f32 %v1997_v46, %v476_v28  ;;  %708 = vadd.xlane.f32.xlu1 %v601_v43  ;;  %710 = vadd.xlane.f32.xlu0 %v602_v33  ;;  %v2300_v44 = vsub.f32 %v2000_v47, %v477_v37 }
 0x12b   : > { %v398_v41 = vpop.xlane.xlu0 %397  ;;  %v400_v52 = vpop.xlane.xlu1 %399 }
 0x12c   : > { %2763 = vst [vmem:[#allocation21_spill] sm:$0xff] %v2297_v27  ;;  %2764 = vst [vmem:[#allocation22_spill] sm:$0xff] %v2300_v44  ;;  %v478_v31 = vmul.f32 0.0078125, %v398_v41  ;;  %v604_v35 = vmul.f32 %v2297_v27, %v2297_v27  ;;  %v479_v39 = vmul.f32 0.0078125, %v400_v52  ;;  %v605_v47 = vmul.f32 %v2300_v44, %v2300_v44 }
 0x12e   : > { %v2307_v29 = vsub.f32 %v2005_v48, %v478_v31  ;;  %712 = vadd.xlane.f32.xlu1 %v603_v45  ;;  %714 = vadd.xlane.f32.xlu0 %v604_v35  ;;  %v2310_v46 = vsub.f32 %v2008_v49, %v479_v39  ;;  %v2768_v48 = vld [vmem:[#allocation8_spill] sm:$0xff] }
 0x12f   : > { %v402_v43 = vpop.xlane.xlu0 %401  ;;  %v404_v28 = vpop.xlane.xlu1 %403 }
 0x130   : > { %2765 = vst [vmem:[#allocation23_spill] sm:$0xff] %v2307_v29  ;;  %2766 = vst [vmem:[#allocation24_spill] sm:$0xff] %v2310_v46  ;;  %v480_v33 = vmul.f32 0.0078125, %v402_v43  ;;  %v606_v37 = vmul.f32 %v2307_v29, %v2307_v29  ;;  %v481_v41 = vmul.f32 0.0078125, %v404_v28  ;;  %v607_v49 = vmul.f32 %v2310_v46, %v2310_v46  ;;  %v2770_v29 = vld [vmem:[#allocation9_spill] sm:$0xff] }
 0x132   : > { %v2317_v52 = vsub.f32 %v2013_v50, %v480_v33  ;;  %716 = vadd.xlane.f32.xlu1 %v605_v47  ;;  %718 = vadd.xlane.f32.xlu0 %v606_v37  ;;  %v2320_v45 = vsub.f32 %v2768_v48, %v481_v41  ;;  %v2772_v50 = vld [vmem:[#allocation10_spill] sm:$0xff] }
 0x133   : > { %v406_v31 = vpop.xlane.xlu0 %405  ;;  %v408_v35 = vpop.xlane.xlu1 %407 }
 0x134   : > { %2767 = vst [vmem:[#allocation25_spill] sm:$0xff] %v2317_v52  ;;  %2769 = vst [vmem:[#allocation8_spill] sm:$0xff] %v2320_v45  ;;  %v482_v39 = vmul.f32 0.0078125, %v406_v31  ;;  %v608_v43 = vmul.f32 %v2317_v52, %v2317_v52  ;;  %v483_v44 = vmul.f32 0.0078125, %v408_v35  ;;  %v609_v33 = vmul.f32 %v2320_v45, %v2320_v45  ;;  %v2774_v52 = vld [vmem:[#allocation11_spill] sm:$0xff] }
 0x136   : > { %v2327_v28 = vsub.f32 %v2770_v29, %v482_v39  ;;  %720 = vadd.xlane.f32.xlu1 %v607_v49  ;;  %722 = vadd.xlane.f32.xlu0 %v608_v43  ;;  %v2330_v47 = vsub.f32 %v2772_v50, %v483_v44  ;;  %v2776_v29 = vld [vmem:[#allocation12_spill] sm:$0xff] }
 0x137   : > { %v410_v37 = vpop.xlane.xlu0 %409  ;;  %v412_v41 = vpop.xlane.xlu1 %411 }
 0x138   : > { %2771 = vst [vmem:[#allocation9_spill] sm:$0xff] %v2327_v28  ;;  %2773 = vst [vmem:[#allocation10_spill] sm:$0xff] %v2330_v47  ;;  %v484_v48 = vmul.f32 0.0078125, %v410_v37  ;;  %v610_v31 = vmul.f32 %v2327_v28, %v2327_v28  ;;  %v485_v46 = vmul.f32 0.0078125, %v412_v41  ;;  %v611_v44 = vmul.f32 %v2330_v47, %v2330_v47  ;;  %v2778_v28 = vld [vmem:[#allocation13_spill] sm:$0xff] }
 0x13a   : > { %v2337_v35 = vsub.f32 %v2774_v52, %v484_v48  ;;  %724 = vadd.xlane.f32.xlu1 %v609_v33  ;;  %726 = vadd.xlane.f32.xlu0 %v610_v31  ;;  %v2340_v49 = vsub.f32 %v2776_v29, %v485_v46  ;;  %v2780_v52 = vld [vmem:[#allocation14_spill] sm:$0xff] }
 0x13b   : > { %v414_v39 = vpop.xlane.xlu0 %413  ;;  %v416_v43 = vpop.xlane.xlu1 %415 }
 0x13c   : > { %2775 = vst [vmem:[#allocation11_spill] sm:$0xff] %v2337_v35  ;;  %2777 = vst [vmem:[#allocation12_spill] sm:$0xff] %v2340_v49  ;;  %v486_v50 = vmul.f32 0.0078125, %v414_v39  ;;  %v612_v37 = vmul.f32 %v2337_v35, %v2337_v35  ;;  %v487_v45 = vmul.f32 0.0078125, %v416_v43  ;;  %v613_v46 = vmul.f32 %v2340_v49, %v2340_v49  ;;  %v2782_v35 = vld [vmem:[#allocation15_spill] sm:$0xff] }
 0x13e   : > { %v2347_v41 = vsub.f32 %v2778_v28, %v486_v50  ;;  %728 = vadd.xlane.f32.xlu1 %v611_v44  ;;  %730 = vadd.xlane.f32.xlu0 %v612_v37  ;;  %v2350_v33 = vsub.f32 %v2780_v52, %v487_v45  ;;  %v2784_v28 = vld [vmem:[#allocation16_spill] sm:$0xff] }
 0x13f   : > { %v418_v48 = vpop.xlane.xlu0 %417  ;;  %v420_v31 = vpop.xlane.xlu1 %419 }
 0x140   : > { %2779 = vst [vmem:[#allocation13_spill] sm:$0xff] %v2347_v41  ;;  %2781 = vst [vmem:[#allocation14_spill] sm:$0xff] %v2350_v33  ;;  %v488_v29 = vmul.f32 0.0078125, %v418_v48  ;;  %v614_v39 = vmul.f32 %v2347_v41, %v2347_v41  ;;  %v489_v47 = vmul.f32 0.0078125, %v420_v31  ;;  %v615_v45 = vmul.f32 %v2350_v33, %v2350_v33  ;;  %v2786_v41 = vld [vmem:[#allocation17_spill] sm:$0xff]  ;;  %v2793_v33 = vld [vmem:[#allocation20_spill] sm:$0xff] }
 0x142   : > { %v2357_v43 = vsub.f32 %v2782_v35, %v488_v29  ;;  %732 = vadd.xlane.f32.xlu1 %v613_v46  ;;  %734 = vadd.xlane.f32.xlu0 %v614_v39  ;;  %v2360_v44 = vsub.f32 %v2784_v28, %v489_v47  ;;  %v2788_v35 = vld [vmem:[#allocation18_spill] sm:$0xff] }
 0x143   : > { %v422_v50 = vpop.xlane.xlu0 %421  ;;  %v424_v37 = vpop.xlane.xlu1 %423 }
 0x144   : > { %2783 = vst [vmem:[#allocation15_spill] sm:$0xff] %v2357_v43  ;;  %2785 = vst [vmem:[#allocation16_spill] sm:$0xff] %v2360_v44  ;;  %v490_v52 = vmul.f32 0.0078125, %v422_v50  ;;  %v616_v48 = vmul.f32 %v2357_v43, %v2357_v43  ;;  %v491_v49 = vmul.f32 0.0078125, %v424_v37  ;;  %v617_v47 = vmul.f32 %v2360_v44, %v2360_v44 }
 0x146   : > { %v2367_v31 = vsub.f32 %v2786_v41, %v490_v52  ;;  %736 = vadd.xlane.f32.xlu1 %v615_v45  ;;  %738 = vadd.xlane.f32.xlu0 %v616_v48  ;;  %v2370_v46 = vsub.f32 %v2788_v35, %v491_v49  ;;  %v2791_v41 = vld [vmem:[#allocation19_spill] sm:$0xff] }
 0x147   : > { %v426_v29 = vpop.xlane.xlu0 %425  ;;  %v428_v39 = vpop.xlane.xlu1 %427 }
 0x148   : > { %2787 = vst [vmem:[#allocation17_spill] sm:$0xff] %v2367_v31  ;;  %2789 = vst [vmem:[#allocation18_spill] sm:$0xff] %v2370_v46  ;;  %v492_v28 = vmul.f32 0.0078125, %v426_v29  ;;  %v618_v50 = vmul.f32 %v2367_v31, %v2367_v31  ;;  %v493_v43 = vmul.f32 0.0078125, %v428_v39  ;;  %v619_v49 = vmul.f32 %v2370_v46, %v2370_v46 }
 0x14a   : > { %v2377_v37 = vsub.f32 %v2061_v62, %v492_v28  ;;  %740 = vadd.xlane.f32.xlu1 %v617_v47  ;;  %742 = vadd.xlane.f32.xlu0 %v618_v50  ;;  %v2380_v45 = vsub.f32 %v2791_v41, %v493_v43 }
 0x14c   : > { %2790 = vst [vmem:[#allocation26_spill] sm:$0xff] %v2377_v37  ;;  %2792 = vst [vmem:[#allocation19_spill] sm:$0xff] %v2380_v45  ;;  %v620_v52 = vmul.f32 %v2377_v37, %v2377_v37  ;;  %v621_v48 = vmul.f32 %v2380_v45, %v2380_v45 }
 0x14e   : > { %744 = vadd.xlane.f32.xlu1 %v619_v49  ;;  %746 = vadd.xlane.f32.xlu0 %v620_v52 }
 0x152   : > { %748 = vadd.xlane.f32.xlu1 %v621_v48 }
 0x15f   : > { %v623_v62 = vpop.xlane.xlu0 %622 }
 0x160   : > { %v750_v35 = vmul.f32 0.0078125, %v623_v62 }
 0x162   : > { %v814_v47 = vadd.f32 1e-06, %v750_v35 }
 0x163   : > { %v625_v29 = vpop.xlane.xlu1 %624  ;;  %v627_v43 = vpop.xlane.xlu0 %626 }
 0x164   : > { %1418 = vrsqrt.f32 %v814_v47  ;;  %v751_v39 = vmul.f32 0.0078125, %v625_v29  ;;  %v752_v28 = vmul.f32 0.0078125, %v627_v43 }
 0x166   : > { %v815_v50 = vadd.f32 1e-06, %v751_v39  ;;  %v816_v41 = vadd.f32 1e-06, %v752_v28 }
 0x167   : > { %v629_v37 = vpop.xlane.xlu1 %628  ;;  %v631_v46 = vpop.xlane.xlu0 %630 }
 0x168   : > { %1420 = vrsqrt.f32 %v815_v50  ;;  %v753_v49 = vmul.f32 0.0078125, %v629_v37  ;;  %v754_v52 = vmul.f32 0.0078125, %v631_v46  ;;  %v2401_v37 = vld [vmem:[%s2393_s9] ss:$0 sm:$0xff] }
 0x169   : > { %1422 = vrsqrt.f32 %v816_v41 }
 0x16a   : > { %v817_v45 = vadd.f32 1e-06, %v753_v49  ;;  %v818_v48 = vadd.f32 1e-06, %v754_v52  ;;  %v2405_v49 = vld [vmem:[%s2398_s23] ss:$0 sm:$0xff] }
 0x16b   : > { %v633_v62 = vpop.xlane.xlu1 %632  ;;  %v635_v35 = vpop.xlane.xlu0 %634 }
 0x16c   : > { %1424 = vrsqrt.f32 %v817_v45  ;;  %v755_v47 = vmul.f32 0.0078125, %v633_v62  ;;  %v756_v29 = vmul.f32 0.0078125, %v635_v35 }
 0x16d   : > { %1426 = vrsqrt.f32 %v818_v48 }
 0x16e   : > { %v1419_v46 = vpop.eup %1418  ;;  %v819_v43 = vadd.f32 1e-06, %v755_v47  ;;  %v820_v39 = vadd.f32 1e-06, %v756_v29 }
 0x16f   : > { %v944_v28 = vmul.f32 %v1419_v46, %v2069_v55  ;;  %v637_v50 = vpop.xlane.xlu1 %636  ;;  %v639_v41 = vpop.xlane.xlu0 %638 }
 0x170   : > { %1428 = vrsqrt.f32 %v819_v43  ;;  %v757_v45 = vmul.f32 0.0078125, %v637_v50  ;;  %v758_v52 = vmul.f32 0.0078125, %v639_v41 }
 0x171   : > { %v1014_v62 = vmul.f32 %v2401_v37, %v944_v28  ;;  %1430 = vrsqrt.f32 %v820_v39 }
 0x172   : > { %v1421_v35 = vpop.eup %1420  ;;  %v821_v48 = vadd.f32 1e-06, %v757_v45  ;;  %v822_v31 = vadd.f32 1e-06, %v758_v52 }
 0x173   : > { %v1423_v44 = vpop.eup %1422  ;;  %v1084_v47 = vadd.f32 %v2405_v49, %v1014_v62  ;;  %v945_v29 = vmul.f32 %v1421_v35, %v2079_v57  ;;  %v641_v55 = vpop.xlane.xlu1 %640 }
 0x174   : > { %v643_v46 = vpop.xlane.xlu0 %642  ;;  %v946_v27 = vmul.f32 %v1423_v44, %v2793_v33  ;;  %1432 = vrsqrt.f32 %v821_v48  ;;  %v759_v43 = vmul.f32 0.0078125, %v641_v55 }
 0x175   : > { %v760_v50 = vmul.f32 0.0078125, %v643_v46  ;;  %1148 = vst [vmem:[%s2413_s28] sm:$0xff] %v1084_v47  ;;  %v1015_v39 = vmul.f32 %v2401_v37, %v945_v29  ;;  %1434 = vrsqrt.f32 %v822_v31 }
 0x176   : > { %v1425_v28 = vpop.eup %1424  ;;  %v1016_v41 = vmul.f32 %v2401_v37, %v946_v27  ;;  %v823_v57 = vadd.f32 1e-06, %v759_v43 }
 0x177   : > { %v824_v45 = vadd.f32 1e-06, %v760_v50  ;;  %v1427_v52 = vpop.eup %1426  ;;  %v1085_v33 = vadd.f32 %v2405_v49, %v1015_v39  ;;  %v947_v44 = vmul.f32 %v1425_v28, %v2082_v0  ;;  %v645_v62 = vpop.xlane.xlu1 %644 }
 0x178   : > { %v647_v35 = vpop.xlane.xlu0 %646  ;;  %v1086_v48 = vadd.f32 %v2405_v49, %v1016_v41  ;;  %v948_v47 = vmul.f32 %v1427_v52, %v2089_v61  ;;  %1436 = vrsqrt.f32 %v823_v57  ;;  %v761_v29 = vmul.f32 0.0078125, %v645_v62 }
 0x179   : > { %1149 = vst [vmem:[%s2413_s28 + $0x8] sm:$0xff] %v1085_v33  ;;  %v1017_v31 = vmul.f32 %v2401_v37, %v947_v44  ;;  %1438 = vrsqrt.f32 %v824_v45  ;;  %v762_v27 = vmul.f32 0.0078125, %v647_v35 }
 0x17a   : > { %v1429_v55 = vpop.eup %1428  ;;  %1150 = vst [vmem:[%s2413_s28 + $0x10] sm:$0xff] %v1086_v48  ;;  %v1018_v46 = vmul.f32 %v2401_v37, %v948_v47  ;;  %v825_v43 = vadd.f32 1e-06, %v761_v29 }
 0x17b   : > { %v1431_v0 = vpop.eup %1430  ;;  %v1087_v50 = vadd.f32 %v2405_v49, %v1017_v31  ;;  %v949_v39 = vmul.f32 %v1429_v55, %v2092_v2  ;;  %v826_v61 = vadd.f32 1e-06, %v762_v27  ;;  %v649_v28 = vpop.xlane.xlu1 %648 }
 0x17c   : > { %v651_v41 = vpop.xlane.xlu0 %650  ;;  %v1088_v57 = vadd.f32 %v2405_v49, %v1018_v46  ;;  %v950_v45 = vmul.f32 %v1431_v0, %v2099_v1  ;;  %1440 = vrsqrt.f32 %v825_v43  ;;  %v763_v52 = vmul.f32 0.0078125, %v649_v28 }
 0x17d   : > { %1151 = vst [vmem:[%s2413_s28 + $0x18] sm:$0xff] %v1087_v50  ;;  %v1019_v33 = vmul.f32 %v2401_v37, %v949_v39  ;;  %1442 = vrsqrt.f32 %v826_v61  ;;  %v764_v44 = vmul.f32 0.0078125, %v651_v41 }
 0x17e   : > { %v1433_v62 = vpop.eup %1432  ;;  %1152 = vst [vmem:[%s2413_s28 + $0x20] sm:$0xff] %v1088_v57  ;;  %v1020_v35 = vmul.f32 %v2401_v37, %v950_v45  ;;  %v827_v2 = vadd.f32 1e-06, %v763_v52 }
 0x17f   : > { %v1435_v48 = vpop.eup %1434  ;;  %v1089_v47 = vadd.f32 %v2405_v49, %v1019_v33  ;;  %v951_v29 = vmul.f32 %v1433_v62, %v2102_v4  ;;  %v828_v1 = vadd.f32 1e-06, %v764_v44  ;;  %v653_v31 = vpop.xlane.xlu1 %652 }
 0x180   : > { %v655_v27 = vpop.xlane.xlu0 %654  ;;  %v1090_v55 = vadd.f32 %v2405_v49, %v1020_v35  ;;  %v952_v46 = vmul.f32 %v1435_v48, %v2109_v51  ;;  %1444 = vrsqrt.f32 %v827_v2  ;;  %v765_v43 = vmul.f32 0.0078125, %v653_v31 }
 0x181   : > { %1153 = vst [vmem:[%s2413_s28 + $0x28] sm:$0xff] %v1089_v47  ;;  %v1021_v0 = vmul.f32 %v2401_v37, %v951_v29  ;;  %1446 = vrsqrt.f32 %v828_v1  ;;  %v766_v50 = vmul.f32 0.0078125, %v655_v27 }
 0x182   : > { %v1437_v39 = vpop.eup %1436  ;;  %1154 = vst [vmem:[%s2413_s28 + $0x30] sm:$0xff] %v1090_v55  ;;  %v1022_v61 = vmul.f32 %v2401_v37, %v952_v46  ;;  %v829_v4 = vadd.f32 1e-06, %v765_v43 }
 0x183   : > { %v1439_v28 = vpop.eup %1438  ;;  %v1091_v41 = vadd.f32 %v2405_v49, %v1021_v0  ;;  %v953_v57 = vmul.f32 %v1437_v39, %v2112_v6  ;;  %v830_v51 = vadd.f32 1e-06, %v766_v50  ;;  %v657_v45 = vpop.xlane.xlu1 %656 }
 0x184   : > { %v659_v52 = vpop.xlane.xlu0 %658  ;;  %v1092_v33 = vadd.f32 %v2405_v49, %v1022_v61  ;;  %v954_v44 = vmul.f32 %v1439_v28, %v2119_v58  ;;  %1448 = vrsqrt.f32 %v829_v4  ;;  %v767_v62 = vmul.f32 0.0078125, %v657_v45 }
 0x185   : > { %1155 = vst [vmem:[%s2413_s28 + $0x38] sm:$0xff] %v1091_v41  ;;  %v1023_v35 = vmul.f32 %v2401_v37, %v953_v57  ;;  %1450 = vrsqrt.f32 %v830_v51  ;;  %v768_v2 = vmul.f32 0.0078125, %v659_v52 }
 0x186   : > { %v1441_v48 = vpop.eup %1440  ;;  %1156 = vst [vmem:[%s2413_s28 + $0x40] sm:$0xff] %v1092_v33  ;;  %v1024_v47 = vmul.f32 %v2401_v37, %v954_v44  ;;  %v831_v6 = vadd.f32 1e-06, %v767_v62 }
 0x187   : > { %v1443_v29 = vpop.eup %1442  ;;  %v1093_v1 = vadd.f32 %v2405_v49, %v1023_v35  ;;  %v955_v31 = vmul.f32 %v1441_v48, %v2122_v8  ;;  %v832_v58 = vadd.f32 1e-06, %v768_v2  ;;  %v661_v27 = vpop.xlane.xlu1 %660 }
 0x188   : > { %v663_v55 = vpop.xlane.xlu0 %662  ;;  %v1094_v46 = vadd.f32 %v2405_v49, %v1024_v47  ;;  %v956_v43 = vmul.f32 %v1443_v29, %v2129_v54  ;;  %1452 = vrsqrt.f32 %v831_v6  ;;  %v769_v0 = vmul.f32 0.0078125, %v661_v27 }
 0x189   : > { %1157 = vst [vmem:[%s2413_s28 + $0x48] sm:$0xff] %v1093_v1  ;;  %v1025_v50 = vmul.f32 %v2401_v37, %v955_v31  ;;  %1454 = vrsqrt.f32 %v832_v58  ;;  %v770_v39 = vmul.f32 0.0078125, %v663_v55 }
 0x18a   : > { %v1445_v61 = vpop.eup %1444  ;;  %1158 = vst [vmem:[%s2413_s28 + $0x50] sm:$0xff] %v1094_v46  ;;  %v1026_v4 = vmul.f32 %v2401_v37, %v956_v43  ;;  %v833_v8 = vadd.f32 1e-06, %v769_v0 }
 0x18b   : > { %v1447_v28 = vpop.eup %1446  ;;  %v1095_v41 = vadd.f32 %v2405_v49, %v1025_v50  ;;  %v957_v57 = vmul.f32 %v1445_v61, %v2132_v10  ;;  %v834_v54 = vadd.f32 1e-06, %v770_v39  ;;  %v665_v51 = vpop.xlane.xlu1 %664 }
 0x18c   : > { %v667_v45 = vpop.xlane.xlu0 %666  ;;  %v1096_v52 = vadd.f32 %v2405_v49, %v1026_v4  ;;  %v958_v33 = vmul.f32 %v1447_v28, %v2139_v59  ;;  %1456 = vrsqrt.f32 %v833_v8  ;;  %v771_v44 = vmul.f32 0.0078125, %v665_v51 }
 0x18d   : > { %1159 = vst [vmem:[%s2413_s28 + $0x58] sm:$0xff] %v1095_v41  ;;  %v1027_v62 = vmul.f32 %v2401_v37, %v957_v57  ;;  %1458 = vrsqrt.f32 %v834_v54  ;;  %v772_v35 = vmul.f32 0.0078125, %v667_v45 }
 0x18e   : > { %v1449_v2 = vpop.eup %1448  ;;  %1160 = vst [vmem:[%s2413_s28 + $0x60] sm:$0xff] %v1096_v52  ;;  %v1028_v48 = vmul.f32 %v2401_v37, %v958_v33  ;;  %v835_v10 = vadd.f32 1e-06, %v771_v44 }
 0x18f   : > { %v1451_v47 = vpop.eup %1450  ;;  %v1097_v6 = vadd.f32 %v2405_v49, %v1027_v62  ;;  %v959_v29 = vmul.f32 %v1449_v2, %v2142_v12  ;;  %v836_v59 = vadd.f32 1e-06, %v772_v35  ;;  %v669_v1 = vpop.xlane.xlu1 %668 }
 0x190   : > { %v671_v31 = vpop.xlane.xlu0 %670  ;;  %v1098_v58 = vadd.f32 %v2405_v49, %v1028_v48  ;;  %v960_v27 = vmul.f32 %v1451_v47, %v2149_v53  ;;  %1460 = vrsqrt.f32 %v835_v10  ;;  %v773_v55 = vmul.f32 0.0078125, %v669_v1 }
 0x191   : > { %1161 = vst [vmem:[%s2413_s28 + $0x68] sm:$0xff] %v1097_v6  ;;  %v1029_v46 = vmul.f32 %v2401_v37, %v959_v29  ;;  %1462 = vrsqrt.f32 %v836_v59  ;;  %v774_v43 = vmul.f32 0.0078125, %v671_v31 }
 0x192   : > { %v1453_v0 = vpop.eup %1452  ;;  %1162 = vst [vmem:[%s2413_s28 + $0x70] sm:$0xff] %v1098_v58  ;;  %v1030_v50 = vmul.f32 %v2401_v37, %v960_v27  ;;  %v837_v12 = vadd.f32 1e-06, %v773_v55 }
 0x193   : > { %v1455_v39 = vpop.eup %1454  ;;  %v1099_v61 = vadd.f32 %v2405_v49, %v1029_v46  ;;  %v961_v4 = vmul.f32 %v1453_v0, %v2152_v14  ;;  %v838_v53 = vadd.f32 1e-06, %v774_v43  ;;  %v673_v8 = vpop.xlane.xlu1 %672 }
 0x194   : > { %v675_v28 = vpop.xlane.xlu0 %674  ;;  %v1100_v41 = vadd.f32 %v2405_v49, %v1030_v50  ;;  %v962_v57 = vmul.f32 %v1455_v39, %v2159_v60  ;;  %1464 = vrsqrt.f32 %v837_v12  ;;  %v775_v54 = vmul.f32 0.0078125, %v673_v8 }
 0x195   : > { %1163 = vst [vmem:[%s2413_s28 + $0x78] sm:$0xff] %v1099_v61  ;;  %v1031_v51 = vmul.f32 %v2401_v37, %v961_v4  ;;  %1466 = vrsqrt.f32 %v838_v53  ;;  %v776_v45 = vmul.f32 0.0078125, %v675_v28 }
 0x196   : > { %v1457_v52 = vpop.eup %1456  ;;  %1164 = vst [vmem:[%s2413_s28 + $0x80] sm:$0xff] %v1100_v41  ;;  %v1032_v33 = vmul.f32 %v2401_v37, %v962_v57  ;;  %v839_v14 = vadd.f32 1e-06, %v775_v54 }
 0x197   : > { %v1459_v44 = vpop.eup %1458  ;;  %v1101_v62 = vadd.f32 %v2405_v49, %v1031_v51  ;;  %v963_v35 = vmul.f32 %v1457_v52, %v2162_v16  ;;  %v840_v60 = vadd.f32 1e-06, %v776_v45  ;;  %v677_v2 = vpop.xlane.xlu1 %676 }
 0x198   : > { %v679_v48 = vpop.xlane.xlu0 %678  ;;  %v1102_v10 = vadd.f32 %v2405_v49, %v1032_v33  ;;  %v964_v47 = vmul.f32 %v1459_v44, %v2169_v56  ;;  %1468 = vrsqrt.f32 %v839_v14  ;;  %v777_v6 = vmul.f32 0.0078125, %v677_v2 }
 0x199   : > { %1165 = vst [vmem:[%s2413_s28 + $0x88] sm:$0xff] %v1101_v62  ;;  %v1033_v29 = vmul.f32 %v2401_v37, %v963_v35  ;;  %1470 = vrsqrt.f32 %v840_v60  ;;  %v778_v59 = vmul.f32 0.0078125, %v679_v48 }
 0x19a   : > { %v1461_v1 = vpop.eup %1460  ;;  %1166 = vst [vmem:[%s2413_s28 + $0x90] sm:$0xff] %v1102_v10  ;;  %v1034_v31 = vmul.f32 %v2401_v37, %v964_v47  ;;  %v841_v16 = vadd.f32 1e-06, %v777_v6 }
 0x19b   : > { %v1463_v58 = vpop.eup %1462  ;;  %v1103_v27 = vadd.f32 %v2405_v49, %v1033_v29  ;;  %v965_v55 = vmul.f32 %v1461_v1, %v2172_v18  ;;  %v842_v56 = vadd.f32 1e-06, %v778_v59  ;;  %v681_v46 = vpop.xlane.xlu1 %680 }
 0x19c   : > { %v683_v43 = vpop.xlane.xlu0 %682  ;;  %v1104_v0 = vadd.f32 %v2405_v49, %v1034_v31  ;;  %v966_v50 = vmul.f32 %v1463_v58, %v2179_v3  ;;  %1472 = vrsqrt.f32 %v841_v16  ;;  %v779_v12 = vmul.f32 0.0078125, %v681_v46 }
 0x19d   : > { %1167 = vst [vmem:[%s2413_s28 + $0x98] sm:$0xff] %v1103_v27  ;;  %v1035_v39 = vmul.f32 %v2401_v37, %v965_v55  ;;  %1474 = vrsqrt.f32 %v842_v56  ;;  %v780_v61 = vmul.f32 0.0078125, %v683_v43 }
 0x19e   : > { %v1465_v4 = vpop.eup %1464  ;;  %1168 = vst [vmem:[%s2413_s28 + $0xa0] sm:$0xff] %v1104_v0  ;;  %v1036_v53 = vmul.f32 %v2401_v37, %v966_v50  ;;  %v843_v18 = vadd.f32 1e-06, %v779_v12 }
 0x19f   : > { %v1467_v8 = vpop.eup %1466  ;;  %v1105_v28 = vadd.f32 %v2405_v49, %v1035_v39  ;;  %v967_v41 = vmul.f32 %v1465_v4, %v2182_v20  ;;  %v844_v3 = vadd.f32 1e-06, %v780_v61  ;;  %v685_v57 = vpop.xlane.xlu1 %684 }
 0x1a0   : > { %v687_v54 = vpop.xlane.xlu0 %686  ;;  %v1106_v51 = vadd.f32 %v2405_v49, %v1036_v53  ;;  %v968_v45 = vmul.f32 %v1467_v8, %v2189_v5  ;;  %1476 = vrsqrt.f32 %v843_v18  ;;  %v781_v52 = vmul.f32 0.0078125, %v685_v57 }
 0x1a1   : > { %1169 = vst [vmem:[%s2413_s28 + $0xa8] sm:$0xff] %v1105_v28  ;;  %v1037_v33 = vmul.f32 %v2401_v37, %v967_v41  ;;  %1478 = vrsqrt.f32 %v844_v3  ;;  %v782_v14 = vmul.f32 0.0078125, %v687_v54 }
 0x1a2   : > { %v1469_v44 = vpop.eup %1468  ;;  %1170 = vst [vmem:[%s2413_s28 + $0xb0] sm:$0xff] %v1106_v51  ;;  %v1038_v62 = vmul.f32 %v2401_v37, %v968_v45  ;;  %v845_v20 = vadd.f32 1e-06, %v781_v52 }
 0x1a3   : > { %v1471_v35 = vpop.eup %1470  ;;  %v1107_v60 = vadd.f32 %v2405_v49, %v1037_v33  ;;  %v969_v2 = vmul.f32 %v1469_v44, %v2192_v22  ;;  %v846_v5 = vadd.f32 1e-06, %v782_v14  ;;  %v689_v48 = vpop.xlane.xlu1 %688 }
 0x1a4   : > { %v691_v10 = vpop.xlane.xlu0 %690  ;;  %v1108_v47 = vadd.f32 %v2405_v49, %v1038_v62  ;;  %v970_v6 = vmul.f32 %v1471_v35, %v2199_v7  ;;  %1480 = vrsqrt.f32 %v845_v20  ;;  %v783_v29 = vmul.f32 0.0078125, %v689_v48 }
 0x1a5   : > { %1171 = vst [vmem:[%s2413_s28 + $0xb8] sm:$0xff] %v1107_v60  ;;  %v1039_v59 = vmul.f32 %v2401_v37, %v969_v2  ;;  %1482 = vrsqrt.f32 %v846_v5  ;;  %v784_v1 = vmul.f32 0.0078125, %v691_v10 }
 0x1a6   : > { %v1473_v31 = vpop.eup %1472  ;;  %1172 = vst [vmem:[%s2413_s28 + $0xc0] sm:$0xff] %v1108_v47  ;;  %v1040_v16 = vmul.f32 %v2401_v37, %v970_v6  ;;  %v847_v22 = vadd.f32 1e-06, %v783_v29 }
 0x1a7   : > { %v1475_v58 = vpop.eup %1474  ;;  %v1109_v27 = vadd.f32 %v2405_v49, %v1039_v59  ;;  %v971_v55 = vmul.f32 %v1473_v31, %v2202_v24  ;;  %v848_v7 = vadd.f32 1e-06, %v784_v1  ;;  %v693_v56 = vpop.xlane.xlu1 %692 }
 0x1a8   : > { %v695_v46 = vpop.xlane.xlu0 %694  ;;  %v1110_v43 = vadd.f32 %v2405_v49, %v1040_v16  ;;  %v972_v0 = vmul.f32 %v1475_v58, %v2209_v9  ;;  %1484 = vrsqrt.f32 %v847_v22  ;;  %v785_v50 = vmul.f32 0.0078125, %v693_v56 }
 0x1a9   : > { %1173 = vst [vmem:[%s2413_s28 + $0xc8] sm:$0xff] %v1109_v27  ;;  %v1041_v12 = vmul.f32 %v2401_v37, %v971_v55  ;;  %1486 = vrsqrt.f32 %v848_v7  ;;  %v786_v39 = vmul.f32 0.0078125, %v695_v46 }
 0x1aa   : > { %v1477_v61 = vpop.eup %1476  ;;  %1174 = vst [vmem:[%s2413_s28 + $0xd0] sm:$0xff] %v1110_v43  ;;  %v1042_v4 = vmul.f32 %v2401_v37, %v972_v0  ;;  %v849_v24 = vadd.f32 1e-06, %v785_v50 }
 0x1ab   : > { %v1479_v53 = vpop.eup %1478  ;;  %v1111_v18 = vadd.f32 %v2405_v49, %v1041_v12  ;;  %v973_v8 = vmul.f32 %v1477_v61, %v2212_v26  ;;  %v850_v9 = vadd.f32 1e-06, %v786_v39  ;;  %v697_v28 = vpop.xlane.xlu1 %696 }
 0x1ac   : > { %v699_v41 = vpop.xlane.xlu0 %698  ;;  %v1112_v3 = vadd.f32 %v2405_v49, %v1042_v4  ;;  %v974_v57 = vmul.f32 %v1479_v53, %v2217_v11  ;;  %1488 = vrsqrt.f32 %v849_v24  ;;  %v787_v54 = vmul.f32 0.0078125, %v697_v28 }
 0x1ad   : > { %1175 = vst [vmem:[%s2413_s28 + $0xd8] sm:$0xff] %v1111_v18  ;;  %v1043_v51 = vmul.f32 %v2401_v37, %v973_v8  ;;  %1490 = vrsqrt.f32 %v850_v9  ;;  %v788_v45 = vmul.f32 0.0078125, %v699_v41 }
 0x1ae   : > { %v1481_v52 = vpop.eup %1480  ;;  %1176 = vst [vmem:[%s2413_s28 + $0xe0] sm:$0xff] %v1112_v3  ;;  %v1044_v33 = vmul.f32 %v2401_v37, %v974_v57  ;;  %v851_v26 = vadd.f32 1e-06, %v787_v54 }
 0x1af   : > { %v1483_v14 = vpop.eup %1482  ;;  %v1113_v44 = vadd.f32 %v2405_v49, %v1043_v51  ;;  %v975_v62 = vmul.f32 %v1481_v52, %v2220_v63  ;;  %v852_v11 = vadd.f32 1e-06, %v788_v45  ;;  %v701_v20 = vpop.xlane.xlu1 %700 }
 0x1b0   : > { %v703_v35 = vpop.xlane.xlu0 %702  ;;  %v1114_v60 = vadd.f32 %v2405_v49, %v1044_v33  ;;  %v976_v2 = vmul.f32 %v1483_v14, %v2227_v13  ;;  %1492 = vrsqrt.f32 %v851_v26  ;;  %v789_v5 = vmul.f32 0.0078125, %v701_v20 }
 0x1b1   : > { %1177 = vst [vmem:[%s2413_s28 + $0xe8] sm:$0xff] %v1113_v44  ;;  %v1045_v48 = vmul.f32 %v2401_v37, %v975_v62  ;;  %1494 = vrsqrt.f32 %v852_v11  ;;  %v790_v10 = vmul.f32 0.0078125, %v703_v35 }
 0x1b2   : > { %v1485_v47 = vpop.eup %1484  ;;  %1178 = vst [vmem:[%s2413_s28 + $0xf0] sm:$0xff] %v1114_v60  ;;  %v1046_v6 = vmul.f32 %v2401_v37, %v976_v2  ;;  %v853_v63 = vadd.f32 1e-06, %v789_v5 }
 0x1b3   : > { %v1487_v29 = vpop.eup %1486  ;;  %v1115_v59 = vadd.f32 %v2405_v49, %v1045_v48  ;;  %v977_v1 = vmul.f32 %v1485_v47, %v2230_v30  ;;  %v854_v13 = vadd.f32 1e-06, %v790_v10  ;;  %v705_v31 = vpop.xlane.xlu1 %704 }
 0x1b4   : > { %v707_v16 = vpop.xlane.xlu0 %706  ;;  %v1116_v22 = vadd.f32 %v2405_v49, %v1046_v6  ;;  %v978_v58 = vmul.f32 %v1487_v29, %v2237_v15  ;;  %1496 = vrsqrt.f32 %v853_v63  ;;  %v791_v27 = vmul.f32 0.0078125, %v705_v31 }
 0x1b5   : > { %1179 = vst [vmem:[%s2413_s28 + $0xf8] sm:$0xff] %v1115_v59  ;;  %v1047_v55 = vmul.f32 %v2401_v37, %v977_v1  ;;  %1498 = vrsqrt.f32 %v854_v13  ;;  %v792_v7 = vmul.f32 0.0078125, %v707_v16 }
 0x1b6   : > { %v1489_v56 = vpop.eup %1488  ;;  %1180 = vst [vmem:[%s2413_s28 + $0x100] sm:$0xff] %v1116_v22  ;;  %v1048_v46 = vmul.f32 %v2401_v37, %v978_v58  ;;  %v855_v30 = vadd.f32 1e-06, %v791_v27 }
 0x1b7   : > { %v1491_v43 = vpop.eup %1490  ;;  %v1117_v0 = vadd.f32 %v2405_v49, %v1047_v55  ;;  %v979_v50 = vmul.f32 %v1489_v56, %v2240_v32  ;;  %v856_v15 = vadd.f32 1e-06, %v792_v7  ;;  %v709_v12 = vpop.xlane.xlu1 %708 }
 0x1b8   : > { %v711_v39 = vpop.xlane.xlu0 %710  ;;  %v1118_v61 = vadd.f32 %v2405_v49, %v1048_v46  ;;  %v980_v4 = vmul.f32 %v1491_v43, %v2247_v17  ;;  %1500 = vrsqrt.f32 %v855_v30  ;;  %v793_v24 = vmul.f32 0.0078125, %v709_v12 }
 0x1b9   : > { %1181 = vst [vmem:[%s2413_s28 + $0x108] sm:$0xff] %v1117_v0  ;;  %v1049_v53 = vmul.f32 %v2401_v37, %v979_v50  ;;  %1502 = vrsqrt.f32 %v856_v15  ;;  %v794_v18 = vmul.f32 0.0078125, %v711_v39 }
 0x1ba   : > { %v1493_v8 = vpop.eup %1492  ;;  %1182 = vst [vmem:[%s2413_s28 + $0x110] sm:$0xff] %v1118_v61  ;;  %v1050_v9 = vmul.f32 %v2401_v37, %v980_v4  ;;  %v857_v32 = vadd.f32 1e-06, %v793_v24 }
 0x1bb   : > { %v1495_v28 = vpop.eup %1494  ;;  %v1119_v41 = vadd.f32 %v2405_v49, %v1049_v53  ;;  %v981_v3 = vmul.f32 %v1493_v8, %v2250_v34  ;;  %v858_v17 = vadd.f32 1e-06, %v794_v18  ;;  %v713_v57 = vpop.xlane.xlu1 %712 }
 0x1bc   : > { %v715_v54 = vpop.xlane.xlu0 %714  ;;  %v1120_v51 = vadd.f32 %v2405_v49, %v1050_v9  ;;  %v982_v45 = vmul.f32 %v1495_v28, %v2257_v19  ;;  %1504 = vrsqrt.f32 %v857_v32  ;;  %v795_v52 = vmul.f32 0.0078125, %v713_v57 }
 0x1bd   : > { %1183 = vst [vmem:[%s2413_s28 + $0x118] sm:$0xff] %v1119_v41  ;;  %v1051_v33 = vmul.f32 %v2401_v37, %v981_v3  ;;  %1506 = vrsqrt.f32 %v858_v17  ;;  %v796_v26 = vmul.f32 0.0078125, %v715_v54  ;;  %v2794_v3 = vld [vmem:[#allocation21_spill] sm:$0xff] }
 0x1be   : > { %v1497_v14 = vpop.eup %1496  ;;  %1184 = vst [vmem:[%s2413_s28 + $0x120] sm:$0xff] %v1120_v51  ;;  %v1052_v44 = vmul.f32 %v2401_v37, %v982_v45  ;;  %v859_v34 = vadd.f32 1e-06, %v795_v52 }
 0x1bf   : > { %v1499_v62 = vpop.eup %1498  ;;  %v1121_v11 = vadd.f32 %v2405_v49, %v1051_v33  ;;  %v983_v20 = vmul.f32 %v1497_v14, %v2260_v36  ;;  %v860_v19 = vadd.f32 1e-06, %v796_v26  ;;  %v717_v35 = vpop.xlane.xlu1 %716  ;;  %v2795_v14 = vld [vmem:[#allocation22_spill] sm:$0xff] }
 0x1c0   : > { %v719_v60 = vpop.xlane.xlu0 %718  ;;  %v1122_v2 = vadd.f32 %v2405_v49, %v1052_v44  ;;  %v984_v5 = vmul.f32 %v1499_v62, %v2267_v21  ;;  %1508 = vrsqrt.f32 %v859_v34  ;;  %v797_v48 = vmul.f32 0.0078125, %v717_v35 }
 0x1c1   : > { %1185 = vst [vmem:[%s2413_s28 + $0x128] sm:$0xff] %v1121_v11  ;;  %v1053_v10 = vmul.f32 %v2401_v37, %v983_v20  ;;  %1510 = vrsqrt.f32 %v860_v19  ;;  %v798_v47 = vmul.f32 0.0078125, %v719_v60  ;;  %v2796_v19 = vld [vmem:[#allocation23_spill] sm:$0xff] }
 0x1c2   : > { %v1501_v6 = vpop.eup %1500  ;;  %1186 = vst [vmem:[%s2413_s28 + $0x130] sm:$0xff] %v1122_v2  ;;  %v1054_v63 = vmul.f32 %v2401_v37, %v984_v5  ;;  %v861_v36 = vadd.f32 1e-06, %v797_v48 }
 0x1c3   : > { %v1503_v29 = vpop.eup %1502  ;;  %v1123_v59 = vadd.f32 %v2405_v49, %v1053_v10  ;;  %v985_v1 = vmul.f32 %v1501_v6, %v2270_v38  ;;  %v862_v21 = vadd.f32 1e-06, %v798_v47  ;;  %v721_v13 = vpop.xlane.xlu1 %720 }
 0x1c4   : > { %v723_v31 = vpop.xlane.xlu0 %722  ;;  %v1124_v16 = vadd.f32 %v2405_v49, %v1054_v63  ;;  %v986_v22 = vmul.f32 %v1503_v29, %v2277_v23  ;;  %1512 = vrsqrt.f32 %v861_v36  ;;  %v799_v58 = vmul.f32 0.0078125, %v721_v13  ;;  %v2797_v36 = vld [vmem:[#allocation24_spill] sm:$0xff] }
 0x1c5   : > { %1187 = vst [vmem:[%s2413_s28 + $0x138] sm:$0xff] %v1123_v59  ;;  %v1055_v27 = vmul.f32 %v2401_v37, %v985_v1  ;;  %1514 = vrsqrt.f32 %v862_v21  ;;  %v800_v55 = vmul.f32 0.0078125, %v723_v31  ;;  %v2798_v31 = vld [vmem:[#allocation25_spill] sm:$0xff] }
 0x1c6   : > { %v1505_v7 = vpop.eup %1504  ;;  %1188 = vst [vmem:[%s2413_s28 + $0x140] sm:$0xff] %v1124_v16  ;;  %v1056_v56 = vmul.f32 %v2401_v37, %v986_v22  ;;  %v863_v38 = vadd.f32 1e-06, %v799_v58 }
 0x1c7   : > { %v1507_v46 = vpop.eup %1506  ;;  %v1125_v30 = vadd.f32 %v2405_v49, %v1055_v27  ;;  %v987_v43 = vmul.f32 %v1505_v7, %v2280_v40  ;;  %v864_v23 = vadd.f32 1e-06, %v800_v55  ;;  %v725_v0 = vpop.xlane.xlu1 %724 }
 0x1c8   : > { %v727_v50 = vpop.xlane.xlu0 %726  ;;  %v1126_v15 = vadd.f32 %v2405_v49, %v1056_v56  ;;  %v988_v12 = vmul.f32 %v1507_v46, %v2287_v25  ;;  %1516 = vrsqrt.f32 %v863_v38  ;;  %v801_v39 = vmul.f32 0.0078125, %v725_v0 }
 0x1c9   : > { %1189 = vst [vmem:[%s2413_s28 + $0x148] sm:$0xff] %v1125_v30  ;;  %v1057_v61 = vmul.f32 %v2401_v37, %v987_v43  ;;  %1518 = vrsqrt.f32 %v864_v23  ;;  %v802_v4 = vmul.f32 0.0078125, %v727_v50  ;;  %v2799_v30 = vld [vmem:[#allocation8_spill] sm:$0xff] }
 0x1ca   : > { %v1509_v24 = vpop.eup %1508  ;;  %1190 = vst [vmem:[%s2413_s28 + $0x150] sm:$0xff] %v1126_v15  ;;  %v1058_v53 = vmul.f32 %v2401_v37, %v988_v12  ;;  %v865_v40 = vadd.f32 1e-06, %v801_v39  ;;  %v2800_v12 = vld [vmem:[#allocation9_spill] sm:$0xff] }
 0x1cb   : > { %v1511_v18 = vpop.eup %1510  ;;  %v1127_v8 = vadd.f32 %v2405_v49, %v1057_v61  ;;  %v989_v9 = vmul.f32 %v1509_v24, %v2290_v42  ;;  %v866_v25 = vadd.f32 1e-06, %v802_v4  ;;  %v729_v32 = vpop.xlane.xlu1 %728 }
 0x1cc   : > { %v731_v28 = vpop.xlane.xlu0 %730  ;;  %v1128_v41 = vadd.f32 %v2405_v49, %v1058_v53  ;;  %v990_v17 = vmul.f32 %v1511_v18, %v2794_v3  ;;  %1520 = vrsqrt.f32 %v865_v40  ;;  %v803_v57 = vmul.f32 0.0078125, %v729_v32 }
 0x1cd   : > { %1191 = vst [vmem:[%s2413_s28 + $0x158] sm:$0xff] %v1127_v8  ;;  %v1059_v54 = vmul.f32 %v2401_v37, %v989_v9  ;;  %1522 = vrsqrt.f32 %v866_v25  ;;  %v804_v51 = vmul.f32 0.0078125, %v731_v28  ;;  %v2801_v25 = vld [vmem:[#allocation10_spill] sm:$0xff] }
 0x1ce   : > { %v1513_v45 = vpop.eup %1512  ;;  %1192 = vst [vmem:[%s2413_s28 + $0x160] sm:$0xff] %v1128_v41  ;;  %v1060_v52 = vmul.f32 %v2401_v37, %v990_v17  ;;  %v867_v42 = vadd.f32 1e-06, %v803_v57  ;;  %v2802_v57 = vld [vmem:[#allocation11_spill] sm:$0xff] }
 0x1cf   : > { %v1515_v33 = vpop.eup %1514  ;;  %v1129_v26 = vadd.f32 %v2405_v49, %v1059_v54  ;;  %v991_v44 = vmul.f32 %v1513_v45, %v2795_v14  ;;  %v868_v34 = vadd.f32 1e-06, %v804_v51  ;;  %v733_v62 = vpop.xlane.xlu1 %732 }
 0x1d0   : > { %v735_v11 = vpop.xlane.xlu0 %734  ;;  %v1130_v20 = vadd.f32 %v2405_v49, %v1060_v52  ;;  %v992_v35 = vmul.f32 %v1515_v33, %v2796_v19  ;;  %1524 = vrsqrt.f32 %v867_v42  ;;  %v805_v60 = vmul.f32 0.0078125, %v733_v62 }
 0x1d1   : > { %1193 = vst [vmem:[%s2413_s28 + $0x168] sm:$0xff] %v1129_v26  ;;  %v1061_v2 = vmul.f32 %v2401_v37, %v991_v44  ;;  %1526 = vrsqrt.f32 %v868_v34  ;;  %v806_v5 = vmul.f32 0.0078125, %v735_v11  ;;  %v2803_v34 = vld [vmem:[#allocation12_spill] sm:$0xff] }
 0x1d2   : > { %v1517_v48 = vpop.eup %1516  ;;  %1194 = vst [vmem:[%s2413_s28 + $0x170] sm:$0xff] %v1130_v20  ;;  %v1062_v10 = vmul.f32 %v2401_v37, %v992_v35  ;;  %v869_v47 = vadd.f32 1e-06, %v805_v60  ;;  %v2804_v35 = vld [vmem:[#allocation13_spill] sm:$0xff] }
 0x1d3   : > { %v1519_v6 = vpop.eup %1518  ;;  %v1131_v63 = vadd.f32 %v2405_v49, %v1061_v2  ;;  %v993_v29 = vmul.f32 %v1517_v48, %v2797_v36  ;;  %v870_v59 = vadd.f32 1e-06, %v806_v5  ;;  %v737_v1 = vpop.xlane.xlu1 %736 }
 0x1d4   : > { %v739_v21 = vpop.xlane.xlu0 %738  ;;  %v1132_v13 = vadd.f32 %v2405_v49, %v1062_v10  ;;  %v994_v16 = vmul.f32 %v1519_v6, %v2798_v31  ;;  %1528 = vrsqrt.f32 %v869_v47  ;;  %v807_v22 = vmul.f32 0.0078125, %v737_v1  ;;  %v1546_v10 = vld [vmem:[%s2393_s9] ss:$0 sm:$0xff] }
 0x1d5   : > { %1195 = vst [vmem:[%s2413_s28 + $0x178] sm:$0xff] %v1131_v63  ;;  %v1063_v58 = vmul.f32 %v2401_v37, %v993_v29  ;;  %1530 = vrsqrt.f32 %v870_v59  ;;  %v808_v27 = vmul.f32 0.0078125, %v739_v21  ;;  %v2805_v29 = vld [vmem:[#allocation14_spill] sm:$0xff]  ;;  %v1547_v1 = vld [vmem:[%s2398_s23] ss:$0 sm:$0xff] }
 0x1d6   : > { %v1521_v55 = vpop.eup %1520  ;;  %1196 = vst [vmem:[%s2413_s28 + $0x180] sm:$0xff] %v1132_v13  ;;  %v1064_v7 = vmul.f32 %v2401_v37, %v994_v16  ;;  %v871_v56 = vadd.f32 1e-06, %v807_v22  ;;  %v2806_v13 = vld [vmem:[#allocation15_spill] sm:$0xff] }
 0x1d7   : > { %v1523_v38 = vpop.eup %1522  ;;  %v1133_v46 = vadd.f32 %v2405_v49, %v1063_v58  ;;  %v995_v43 = vmul.f32 %v1521_v55, %v2799_v30  ;;  %v872_v23 = vadd.f32 1e-06, %v808_v27  ;;  %v741_v0 = vpop.xlane.xlu1 %740  ;;  %v2807_v55 = vld [vmem:[#allocation16_spill] sm:$0xff] }
 0x1d8   : > { %v743_v50 = vpop.xlane.xlu0 %742  ;;  %v1134_v15 = vadd.f32 %v2405_v49, %v1064_v7  ;;  %v996_v39 = vmul.f32 %v1523_v38, %v2800_v12  ;;  %1532 = vrsqrt.f32 %v871_v56  ;;  %v809_v61 = vmul.f32 0.0078125, %v741_v0  ;;  %v2808_v56 = vld [vmem:[#allocation17_spill] sm:$0xff] }
 0x1d9   : > { %1197 = vst [vmem:[%s2413_s28 + $0x188] sm:$0xff] %v1133_v46  ;;  %v1065_v4 = vmul.f32 %v2401_v37, %v995_v43  ;;  %1534 = vrsqrt.f32 %v872_v23  ;;  %v810_v24 = vmul.f32 0.0078125, %v743_v50  ;;  %v2809_v50 = vld [vmem:[#allocation18_spill] sm:$0xff] }
 0x1da   : > { %v1525_v53 = vpop.eup %1524  ;;  %1198 = vst [vmem:[%s2413_s28 + $0x190] sm:$0xff] %v1134_v15  ;;  %v1066_v40 = vmul.f32 %v2401_v37, %v996_v39  ;;  %v873_v18 = vadd.f32 1e-06, %v809_v61  ;;  %v2810_v39 = vld [vmem:[#allocation26_spill] sm:$0xff] }
 0x1db   : > { %v1527_v8 = vpop.eup %1526  ;;  %v1135_v9 = vadd.f32 %v2405_v49, %v1065_v4  ;;  %v997_v32 = vmul.f32 %v1525_v53, %v2801_v25  ;;  %v874_v28 = vadd.f32 1e-06, %v810_v24  ;;  %v745_v41 = vpop.xlane.xlu1 %744 }
 0x1dc   : > { %v747_v3 = vpop.xlane.xlu0 %746  ;;  %v1136_v17 = vadd.f32 %v2405_v49, %v1066_v40  ;;  %v998_v54 = vmul.f32 %v1527_v8, %v2802_v57  ;;  %1536 = vrsqrt.f32 %v873_v18  ;;  %v811_v51 = vmul.f32 0.0078125, %v745_v41  ;;  %v2811_v18 = vld [vmem:[#allocation19_spill] sm:$0xff] }
 0x1dd   : > { %1199 = vst [vmem:[%s2413_s28 + $0x198] sm:$0xff] %v1135_v9  ;;  %v1067_v45 = vmul.f32 %v2401_v37, %v997_v32  ;;  %1538 = vrsqrt.f32 %v874_v28  ;;  %v812_v52 = vmul.f32 0.0078125, %v747_v3 }
 0x1de   : > { %v1529_v42 = vpop.eup %1528  ;;  %1200 = vst [vmem:[%s2413_s28 + $0x1a0] sm:$0xff] %v1136_v17  ;;  %v1068_v33 = vmul.f32 %v2401_v37, %v998_v54  ;;  %v875_v26 = vadd.f32 1e-06, %v811_v51 }
 0x1df   : > { %v1531_v14 = vpop.eup %1530  ;;  %v1137_v44 = vadd.f32 %v2405_v49, %v1067_v45  ;;  %v999_v62 = vmul.f32 %v1529_v42, %v2803_v34  ;;  %v876_v11 = vadd.f32 1e-06, %v812_v52  ;;  %v749_v20 = vpop.xlane.xlu1 %748 }
 0x1e0   : > { %v1138_v19 = vadd.f32 %v2405_v49, %v1068_v33  ;;  %v1000_v60 = vmul.f32 %v1531_v14, %v2804_v35  ;;  %1540 = vrsqrt.f32 %v875_v26  ;;  %v813_v2 = vmul.f32 0.0078125, %v749_v20 }
 0x1e1   : > { %1201 = vst [vmem:[%s2413_s28 + $0x1a8] sm:$0xff] %v1137_v44  ;;  %v1069_v5 = vmul.f32 %v2401_v37, %v999_v62  ;;  %1542 = vrsqrt.f32 %v876_v11 }
 0x1e2   : > { %v1533_v48 = vpop.eup %1532  ;;  %1202 = vst [vmem:[%s2413_s28 + $0x1b0] sm:$0xff] %v1138_v19  ;;  %v1070_v47 = vmul.f32 %v1546_v10, %v1000_v60  ;;  %v877_v6 = vadd.f32 1e-06, %v813_v2 }
 0x1e3   : > { %v1535_v63 = vpop.eup %1534  ;;  %v1139_v36 = vadd.f32 %v2405_v49, %v1069_v5  ;;  %v1001_v59 = vmul.f32 %v1533_v48, %v2805_v29 }
 0x1e4   : > { %v1140_v21 = vadd.f32 %v1547_v1, %v1070_v47  ;;  %v1002_v31 = vmul.f32 %v1535_v63, %v2806_v13  ;;  %1544 = vrsqrt.f32 %v877_v6 }
 0x1e5   : > { %1203 = vst [vmem:[%s2413_s28 + $0x1b8] sm:$0xff] %v1139_v36  ;;  %v1071_v37 = vmul.f32 %v1546_v10, %v1001_v59 }
 0x1e6   : > { %v1537_v16 = vpop.eup %1536  ;;  %1204 = vst [vmem:[%s2413_s28 + $0x1c0] sm:$0xff] %v1140_v21  ;;  %v1072_v22 = vmul.f32 %v1546_v10, %v1002_v31 }
 0x1e7   : > { %v1539_v58 = vpop.eup %1538  ;;  %v1141_v27 = vadd.f32 %v1547_v1, %v1071_v37  ;;  %v1003_v7 = vmul.f32 %v1537_v16, %v2807_v55 }
 0x1e8   : > { %v1142_v49 = vadd.f32 %v1547_v1, %v1072_v22  ;;  %v1004_v38 = vmul.f32 %v1539_v58, %v2808_v56 }
 0x1e9   : > { %1205 = vst [vmem:[%s2413_s28 + $0x1c8] sm:$0xff] %v1141_v27  ;;  %v1073_v46 = vmul.f32 %v1546_v10, %v1003_v7 }
 0x1ea   : > { %v1541_v30 = vpop.eup %1540  ;;  %1206 = vst [vmem:[%s2413_s28 + $0x1d0] sm:$0xff] %v1142_v49  ;;  %v1074_v43 = vmul.f32 %v1546_v10, %v1004_v38 }
 0x1eb   : > { %v1543_v23 = vpop.eup %1542  ;;  %v1143_v0 = vadd.f32 %v1547_v1, %v1073_v46  ;;  %v1005_v15 = vmul.f32 %v1541_v30, %v2809_v50 }
 0x1ec   : > { %v1144_v12 = vadd.f32 %v1547_v1, %v1074_v43  ;;  %v1006_v61 = vmul.f32 %v1543_v23, %v2810_v39 }
 0x1ed   : > { %1207 = vst [vmem:[%s2413_s28 + $0x1d8] sm:$0xff] %v1143_v0  ;;  %v1075_v4 = vmul.f32 %v1546_v10, %v1005_v15 }
 0x1ee   : > { %v1545_v24 = vpop.eup %1544  ;;  %1208 = vst [vmem:[%s2413_s28 + $0x1e0] sm:$0xff] %v1144_v12  ;;  %v1076_v53 = vmul.f32 %v1546_v10, %v1006_v61 }
 0x1ef   : > { %v1145_v40 = vadd.f32 %v1547_v1, %v1075_v4  ;;  %v1007_v8 = vmul.f32 %v1545_v24, %v2811_v18 }
 0x1f0   : > { %v1146_v9 = vadd.f32 %v1547_v1, %v1076_v53 }
 0x1f1   : > { %1209 = vst [vmem:[%s2413_s28 + $0x1e8] sm:$0xff] %v1145_v40  ;;  %v1077_v25 = vmul.f32 %v1546_v10, %v1007_v8 }
 0x1f2   : > { %1210 = vst [vmem:[%s2413_s28 + $0x1f0] sm:$0xff] %v1146_v9 }
 0x1f3   : > { %v1147_v32 = vadd.f32 %v1547_v1, %v1077_v25 }
 0x1f5   : > { %1211 = vst [vmem:[%s2413_s28 + $0x1f8] sm:$0xff] %v1147_v32 }
 0x1f6   : > { %1591 = shalt.err (!%p1588_p4)
}
 0x1f7   : > { %s1592_s6 = scalar_lea.hbm %s2656_s7, 8192  ;;  %s1596_s10 = scalar_lea.hbm %s2711_s3, 16384 }
 0x1f8   : > { %p1593_p7 = scmp.ne.s32.totalorder %s2656_s7, %s1592_s6  ;;  %p1597_p1 = scmp.lt.u32.totalorder %s2656_s7, %s2711_s3 }
 0x1f9   : > { %p1598_p3 = scmp.lt.u32.totalorder %s1596_s10, %s1592_s6  ;;  %p1600_p9 = scmp.lt.u32.totalorder %s1592_s6, %s2656_s7 }
 0x1fa   : > { %p1594_p10 = pnand %p1593_p7, %p2812_p11 }
 0x1fb   : > { %p1599_p8 = por %p1598_p3, %p1597_p1 }
 0x1fc   : > { %p1595_p12 = pneg %p1594_p10 }
 0x1fd   : > { %p1601_p0 = por %p1600_p9, %p1599_p8 }
 0x1ff   : > { %p1602_p6 = pnand %p1601_p0, %p1595_p12 }
 0x201   : > { %1605 = shalt.err (!%p1602_p6)
}
 0x202   : > { %s1666_s28 = smov 128   ;;  %s1667_s29 = smov 8  }
 0x203   : > { %1354 = dma.vmem_to_hbm [thread:$0]  (%p2812_p11), %s2658_s30, 8192, %s2656_s7, %s1213_s18, %s1666_s28, %s1666_s28, %s1667_s29  }
 0x204 PF: > { %s1243_s4 = sand.u32 1, %s1640_s12   ;;  %p2813_p13 = scmp.ne.s32.totalorder %s2747_s27, 0 }
 0x205   : > { %p2814_p2 = scmp.ge.s32.totalorder %s1660_s17, 2  ;;  %s1244_s5 = scalar_lea.sflag [#allocation4], %s1243_s4 }
 0x207   : > { %p1361_p5 = pnand %p2814_p2, %p2813_p13 }
 0x209   : > { %1635 = dma.done.wait (!%p1361_p5), %s1244_s5, 8192  }
 0x20a   : > { %1637 = vsyncadd (!%p1361_p5), %s1244_s5, 4294959104  ;;  %s19_s17 = sadd.s32 1, %s1660_s17   ;;  %s2815_s12 = smov %s1644_s13 }
 0x20b   : > { %p16_p4 = scmp.ge.s32.totalorder %s19_s17, 4   ;;  %s2816_s13 = smov %s1648_s14 }
 0x20c   : > { %s2817_s14 = smov %s1744_s26  ;;  %s2818_s15 = smov %s1656_s16 }
 0x20d   : > { %s2819_s16 = smov %s2821_s20  ;;  %18 = sbr.rel (!%p16_p4) target bundleno = 6 (0x6), region = 83 }
 0x214   :  { %1249 = vsyncpa [#allocation3], 1 }
 0x215   :  { %1251 = vsyncpa [#allocation3 + $0x1], 1 }
 0x216   :  { %1252 = vsyncpa [#allocation4], 1 }
 0x217   :  { %1254 = vsyncpa [#allocation4 + $0x1], 1 }

</bundles_post_ra>
